<compile_context>
chip_gen: v6e
topology: v6e:2x2x1
jax: 0.10.0
libtpu: 0.0.40
codegen_flags: <defaults>
</compile_context>

<pallas_src>
import math

import jax
import jax.numpy as jnp
from jax.experimental import pallas as pl
from jax.experimental.pallas import tpu as pltpu

FUSION_DIM = 128   # Configuration.fusion_dim (small demo value)
BATCH = 16         # >=16 rows fills a packed bf16 LHS vreg (v6e review note)
_LN_EPS = 1e-5     # torch.nn.LayerNorm default


# ---------------------------------------------------------------------------
# math helpers (shared by the Pallas kernel and the matched XLA reference)
# ---------------------------------------------------------------------------
def _gelu(x):
    # tanh-approximate GELU: one EUP tanh + a few VPU ops on the critical path
    # (vs. a ~12-op serial VALU erf polynomial). |err| vs exact GELU < ~3e-3.
    c = math.sqrt(2.0 / math.pi)
    return 0.5 * x * (1.0 + jnp.tanh(c * (x + 0.044715 * x * x * x)))


def _dense(x, w, b):
    # bf16 x bf16 -> f32 accumulation: one MXU pass on v5e / v6e / v7x.
    return jnp.dot(x.astype(w.dtype), w, preferred_element_type=jnp.float32) + b


def _layernorm(x, g, b):
    # one-pass form: sum(x) and sum(x*x) are independent cross-lane reductions
    # that overlap on the XLU instead of serializing mu -> var.
    n = x.shape[-1]
    mu = jnp.sum(x, axis=-1, keepdims=True) * (1.0 / n)
    ex2 = jnp.sum(x * x, axis=-1, keepdims=True) * (1.0 / n)
    var = ex2 - mu * mu
    return (x - mu) * jax.lax.rsqrt(var + _LN_EPS) * g + b


# ---------------------------------------------------------------------------
# Pallas kernel: full fused forward, single invocation, DMA/compute overlap
# ---------------------------------------------------------------------------
def fusion_kernel(txt_ref, vec_ref, slabA_hbm, slabB_hbm, out_ref,
                  wA, wB, sems):
    d = txt_ref.shape[1]                      # fusion_dim
    bf16 = jnp.bfloat16

    # ---- issue all weight DMAs up front (in order of first use); wait on
    #      each one only right before its matmul so HBM traffic hides behind
    #      the serial MXU/VPU chain instead of a serial prologue. -----------
    def chunk(src, dst, row0, rows, i):
        return pltpu.make_async_copy(src.at[pl.ds(row0, rows)],
                                     dst.at[pl.ds(row0, rows)],
                                     sems.at[i])

    cp_tW1 = chunk(slabB_hbm, wB, 0 * d, 1 * d, 0)   # (d, 2d)
    cp_tW2 = chunk(slabA_hbm, wA, 0 * d, 2 * d, 1)   # (2d, d)
    cp_aW  = chunk(slabA_hbm, wA, 2 * d, 1 * d, 2)   # (d, d)
    cp_gW  = chunk(slabA_hbm, wA, 3 * d, 1 * d, 3)   # (d, d)
    cp_sW  = chunk(slabB_hbm, wB, 1 * d, 1 * d, 4)   # (d, 2d)
    cp_fW1 = chunk(slabB_hbm, wB, 2 * d, 3 * d, 5)   # (3d, 2d)
    cp_fW2 = chunk(slabB_hbm, wB, 5 * d, 2 * d, 6)   # (2d, 2d)
    for cp in (cp_tW1, cp_tW2, cp_aW, cp_gW, cp_sW, cp_fW1, cp_fW2):
        cp.start()

    # ---- unpack the single packed bias / LN-gamma/beta slab (f32) ----------
    v = vec_ref[...]                                  # (15, 2d)
    tb1, tg1, tbe1 = v[0:1], v[1:2], v[2:3]
    s_b, s_g, s_be = v[3:4], v[4:5], v[5:6]
    fb1, fg1, fbe1, fb2 = v[6:7], v[7:8], v[8:9], v[9:10]
    tb2, tg2, tbe2 = v[10:11, :d], v[11:12, :d], v[12:13, :d]
    ab, gb = v[13:14, :d], v[14:15, :d]

    txt = txt_ref[...]                                # (N, d) f32

    # text_input_proj: Linear(d,2d)->LN->GELU->Dropout(id)->Linear(2d,d)->LN
    cp_tW1.wait()
    h = _gelu(_layernorm(_dense(txt, wB[0:d, :], tb1), tg1, tbe1))
    cp_tW2.wait()
    text_proj = _layernorm(_dense(h, wA[0:2 * d, :], tb2), tg2, tbe2)

    # 3 weighted seq-len-1 MHA heads, pre-folded into one affine map
    # (softmax over a single key == 1, so att_i = out_proj_i(v_proj_i(text))).
    cp_aW.wait()
    combined = _dense(text_proj, wA[2 * d:3 * d, :], ab)

    # gate: Linear(d,d) + Sigmoid, then elementwise gating
    cp_gW.wait()
    gated = combined * jax.nn.sigmoid(_dense(combined, wA[3 * d:4 * d, :], gb))

    # two semantic projections fused into one (d,2d) matmul; per-half LN+GELU
    cp_sW.wait()
    semc = _dense(gated, wB[d:2 * d, :], s_b)                      # (N, 2d)
    sem0 = _gelu(_layernorm(semc[:, :d], s_g[:, :d], s_be[:, :d]))
    sem1 = _gelu(_layernorm(semc[:, d:], s_g[:, d:], s_be[:, d:]))

    # final_fusion on concat([gated, sem0, sem1]) -- concat-free: three
    # (d,2d) partial matmuls accumulate into one f32 accumulator.
    cp_fW1.wait()
    acc = jnp.dot(gated.astype(bf16), wB[2 * d:3 * d, :],
                  preferred_element_type=jnp.float32)
    acc = acc + jnp.dot(sem0.astype(bf16), wB[3 * d:4 * d, :],
                        preferred_element_type=jnp.float32)
    acc = acc + jnp.dot(sem1.astype(bf16), wB[4 * d:5 * d, :],
                        preferred_element_type=jnp.float32)
    h2 = _gelu(_layernorm(acc + fb1, fg1, fbe1))

    cp_fW2.wait()
    out_ref[...] = _dense(h2, wB[5 * d:7 * d, :], fb2)             # (N, 2d)


# ---------------------------------------------------------------------------
# wrapper
# ---------------------------------------------------------------------------
def multimodal_fusion(image_projection, text_projection, prepared):
    # image_projection is accepted for interface parity with the PyTorch
    # module, but with seq_len==1 attention (softmax == 1) the query/key path
    # cannot influence the output, so it is never shipped to the kernel.
    del image_projection
    slabA, slabB, vecs = prepared
    n, d = text_projection.shape
    vmem = pl.BlockSpec(memory_space=pltpu.MemorySpace.VMEM)
    hbm = pl.BlockSpec(memory_space=pl.ANY)
    # TODO(synk): for repeated inference with fixed weights, keep the packed
    # slabs resident across calls (cross-pallas_call prefetch) instead of
    # re-DMAing ~576 KiB per invocation.
    return pl.pallas_call(
        fusion_kernel,
        out_shape=jax.ShapeDtypeStruct((n, 2 * d), jnp.float32),
        in_specs=[vmem, vmem, hbm, hbm],
        out_specs=vmem,
        scratch_shapes=[
            pltpu.VMEM(slabA.shape, slabA.dtype),     # weight slab A (lane-128)
            pltpu.VMEM(slabB.shape, slabB.dtype),     # weight slab B (lane-256)
            pltpu.SemaphoreType.DMA((7,)),            # one sem per weight chunk
        ],
    )(text_projection, vecs, slabA, slabB)


# ---------------------------------------------------------------------------
# one-time (wrapper-side) parameter folding / packing
# ---------------------------------------------------------------------------
def prepare_params(aw, raw, weight_dtype=jnp.bfloat16):
    (tW1, tb1, tg1, tbe1, tW2, tb2, tg2, tbe2,
     vW0, vb0, oW0, ob0, vW1, vb1, oW1, ob1, vW2, vb2, oW2, ob2,
     gW, gb,
     sW0, sb0, sg0, sbe0, sW1, sb1, sg1, sbe1,
     fW1, fb1, fg1, fbe1, fW2, fb2) = raw
    d = tW1.shape[0]
    hp = jax.lax.Precision.HIGHEST

    # Fold the 3 weighted seq-len-1 attention heads into one affine map.
    # The module applies the raw attention_weights (no softmax/normalization),
    # so this fold is exact for arbitrary learned weights.
    aW = jnp.zeros_like(gW)
    ab = jnp.zeros_like(gb)
    for w, (vW, vb, oW, ob) in zip(aw, ((vW0, vb0, oW0, ob0),
                                        (vW1, vb1, oW1, ob1),
                                        (vW2, vb2, oW2, ob2))):
        aW = aW + w * jnp.dot(vW, oW, precision=hp)
        ab = ab + w * (jnp.dot(vb, oW, precision=hp) + ob)

    # The two (d,d) semantic projections share one (d,2d) matmul.
    sW = jnp.concatenate([sW0, sW1], axis=1)
    s_b = jnp.concatenate([sb0, sb1], axis=1)
    s_g = jnp.concatenate([sg0, sg1], axis=1)
    s_be = jnp.concatenate([sbe0, sbe1], axis=1)

    # Two contiguous bf16 weight slabs (HBM side of the in-kernel DMA overlap):
    #   slab A (lane-128): [tW2; aW; gW]        -> (4d, d)
    #   slab B (lane-256): [tW1; sW; fW1; fW2]  -> (7d, 2d)
    slabA = jnp.concatenate([tW2, aW, gW], axis=0).astype(weight_dtype)
    slabB = jnp.concatenate([tW1, sW, fW1, fW2], axis=0).astype(weight_dtype)

    # All tiny bias / LN-gamma/beta rows packed into ONE (15, 2d) f32 slab
    # (128-wide rows zero-padded to 2d) -> a single small prologue DMA.
    pad = lambda x: jnp.pad(x, ((0, 0), (0, d)))
    vecs = jnp.concatenate(
        [tb1, tg1, tbe1, s_b, s_g, s_be, fb1, fg1, fbe1, fb2,
         pad(tb2), pad(tg2), pad(tbe2), pad(ab), pad(gb)],
        axis=0).astype(jnp.float32)
    return slabA, slabB, vecs


# ---------------------------------------------------------------------------
# deterministic synthetic parameters (shapes from MultiModalFusion.__init__)
# ---------------------------------------------------------------------------
def build_params(key, d):
    keys = iter(jax.random.split(key, 64))

    def w(shape, scale=0.02):
        return (scale * jax.random.normal(next(keys), shape)).astype(jnp.float32)

    def ones(shape):
        return jnp.ones(shape, jnp.float32)

    def zeros(shape):
        return jnp.zeros(shape, jnp.float32)

    p = []
    # text_input_proj: Linear(d,2d), LN(2d), GELU, Dropout, Linear(2d,d), LN(d)
    p += [w((d, 2 * d)), w((1, 2 * d), 0.01), ones((1, 2 * d)), zeros((1, 2 * d)),
          w((2 * d, d)), w((1, d), 0.01), ones((1, d)), zeros((1, d))]
    # (image_input_proj params are intentionally not materialized: the image
    #  branch cannot influence this eval-mode forward path.)
    # 3 attention heads: only the V in-projection + out-projection matter
    for _ in range(3):
        p += [w((d, d)), w((1, d), 0.01), w((d, d)), w((1, d), 0.01)]
    # gate: Linear(d,d) + Sigmoid
    p += [w((d, d)), w((1, d), 0.01)]
    # 2 semantic projections: Linear(d,d), LN(d), GELU, Dropout
    for _ in range(2):
        p += [w((d, d)), w((1, d), 0.01), ones((1, d)), zeros((1, d))]
    # final fusion: Linear(3d,2d), LN(2d), GELU, Dropout, Linear(2d,2d)
    p += [w((3 * d, 2 * d)), w((1, 2 * d), 0.01), ones((1, 2 * d)), zeros((1, 2 * d)),
          w((2 * d, 2 * d)), w((1, 2 * d), 0.01)]

    # non-uniform weights: exercises the general (unnormalized) head fold
    aw = jnp.array([0.5, 0.2, 0.3], jnp.float32)
    return aw, p


# ---------------------------------------------------------------------------
# pure-JAX references
# ---------------------------------------------------------------------------
def reference_prepared(txt, prepared):
    """Exactly the kernel's math & dtypes, traced through plain XLA."""
    slabA, slabB, vecs = prepared
    d = slabA.shape[1]
    tW2, aW, gW = slabA[0:2 * d], slabA[2 * d:3 * d], slabA[3 * d:4 * d]
    tW1, sW = slabB[0:d], slabB[d:2 * d]
    fW1a, fW1b, fW1c = slabB[2 * d:3 * d], slabB[3 * d:4 * d], slabB[4 * d:5 * d]
    fW2 = slabB[5 * d:7 * d]
    v = vecs
    tb1, tg1, tbe1 = v[0:1], v[1:2], v[2:3]
    s_b, s_g, s_be = v[3:4], v[4:5], v[5:6]
    fb1, fg1, fbe1, fb2 = v[6:7], v[7:8], v[8:9], v[9:10]
    tb2, tg2, tbe2 = v[10:11, :d], v[11:12, :d], v[12:13, :d]
    ab, gb = v[13:14, :d], v[14:15, :d]

    h = _gelu(_layernorm(_dense(txt, tW1, tb1), tg1, tbe1))
    text_proj = _layernorm(_dense(h, tW2, tb2), tg2, tbe2)
    combined = _dense(text_proj, aW, ab)
    gated = combined * jax.nn.sigmoid(_dense(combined, gW, gb))
    semc = _dense(gated, sW, s_b)
    sem0 = _gelu(_layernorm(semc[:, :d], s_g[:, :d], s_be[:, :d]))
    sem1 = _gelu(_layernorm(semc[:, d:], s_g[:, d:], s_be[:, d:]))
    acc = (jnp.dot(gated.astype(jnp.bfloat16), fW1a, preferred_element_type=jnp.float32)
           + jnp.dot(sem0.astype(jnp.bfloat16), fW1b, preferred_element_type=jnp.float32)
           + jnp.dot(sem1.astype(jnp.bfloat16), fW1c, preferred_element_type=jnp.float32))
    h2 = _gelu(_layernorm(acc + fb1, fg1, fbe1))
    return _dense(h2, fW2, fb2)


def _gelu_exact(x):
    return 0.5 * x * (1.0 + jax.lax.erf(x * (1.0 / math.sqrt(2.0))))


def _layernorm_2pass(x, g, b):
    mu = jnp.mean(x, axis=-1, keepdims=True)
    var = jnp.mean(jnp.square(x - mu), axis=-1, keepdims=True)
    return (x - mu) * jax.lax.rsqrt(var + _LN_EPS) * g + b


def reference_module(txt, aw, raw):
    """Module-faithful eval-mode forward: full f32 (HIGHEST), exact-erf GELU,
    two-pass LayerNorm, per-head un-fused attention (seq_len==1 => softmax==1
    => att_i = out_proj_i(v_proj_i(text_proj)))."""
    hp = jax.lax.Precision.HIGHEST

    def dense(x, w, b):
        return jnp.dot(x, w, precision=hp, preferred_element_type=jnp.float32) + b

    (tW1, tb1, tg1, tbe1, tW2, tb2, tg2, tbe2,
     vW0, vb0, oW0, ob0, vW1, vb1, oW1, ob1, vW2, vb2, oW2, ob2,
     gW, gb,
     sW0, sb0, sg0, sbe0, sW1, sb1, sg1, sbe1,
     fW1, fb1, fg1, fbe1, fW2, fb2) = raw
    h = _gelu_exact(_layernorm_2pass(dense(txt, tW1, tb1), tg1, tbe1))
    text_proj = _layernorm_2pass(dense(h, tW2, tb2), tg2, tbe2)
    combined = 0.0
    for w, (vW, vb, oW, ob) in zip(aw, ((vW0, vb0, oW0, ob0),
                                        (vW1, vb1, oW1, ob1),
                                        (vW2, vb2, oW2, ob2))):
        combined = combined + dense(dense(text_proj, vW, vb), oW, ob) * w
    gated = combined * jax.nn.sigmoid(dense(combined, gW, gb))
    sem0 = _gelu_exact(_layernorm_2pass(dense(gated, sW0, sb0), sg0, sbe0))
    sem1 = _gelu_exact(_layernorm_2pass(dense(gated, sW1, sb1), sg1, sbe1))
    cat = jnp.concatenate([gated, sem0, sem1], axis=-1)
    h2 = _gelu_exact(_layernorm_2pass(dense(cat, fW1, fb1), fg1, fbe1))
    return dense(h2, fW2, fb2)


if __name__ == "__main__":
    key = jax.random.PRNGKey(0)
    k_img, k_txt, k_par = jax.random.split(key, 3)
    d, n = FUSION_DIM, BATCH

    image_projection = jax.random.normal(k_img, (n, d), jnp.float32)
    text_projection = jax.random.normal(k_txt, (n, d), jnp.float32)
    aw, raw_params = build_params(k_par, d)
    prepared = prepare_params(aw, raw_params)

    out = multimodal_fusion(image_projection, text_projection, prepared)
    out = jax.block_until_ready(out)
    assert out.shape == (n, 2 * d) and out.dtype == jnp.float32

    # 1) Pallas plumbing check: identical math & dtypes run through plain XLA.
    ref_k = reference_prepared(text_projection, prepared)
    d1 = float(jnp.max(jnp.abs(out - ref_k)))
    assert d1 < 2e-3, f"kernel vs matched reference mismatch: {d1}"

    # 2) Module-semantics check (full f32, exact-erf GELU, per-head un-fused).
    #    Relative-L2 tolerance covers the declared numerics budget:
    #    bf16 matmul operands + tanh-GELU + one-pass LayerNorm.
    ref_m = reference_module(text_projection, aw, raw_params)
    rel = float(jnp.linalg.norm(out - ref_m) /
                (jnp.linalg.norm(ref_m) + 1e-12))
    assert rel < 2e-2, f"kernel vs module reference relative error: {rel}"

    print("KERNEL_OK")
</pallas_src>

<mosaic_0001>
module attributes {stable_mosaic.version = 11 : i64} {
  func.func @fusion_kernel(%arg0: memref<16x128xf32, #tpu.memory_space<vmem>>, %arg1: memref<15x256xf32, #tpu.memory_space<vmem>>, %arg2: memref<512x128xbf16, #tpu.memory_space<any>>, %arg3: memref<896x256xbf16, #tpu.memory_space<any>>, %arg4: memref<16x256xf32, #tpu.memory_space<vmem>>, %arg5: memref<512x128xbf16, #tpu.memory_space<vmem>>, %arg6: memref<896x256xbf16, #tpu.memory_space<vmem>>, %arg7: memref<7x!tpu.dma_semaphore, #tpu.memory_space<semaphore_mem>>) attributes {dimension_semantics = [], scalar_prefetch = 0 : i64, scratch_operands = 3 : i64, tpu.core_type = #tpu.core_type<tc>} {
    %c0_i32 = arith.constant 0 : i32
    %c0_i32_0 = arith.constant 0 : i32
    %c0_i32_1 = arith.constant 0 : i32
    %0 = tpu.memref_slice %arg3[%c0_i32_0, %c0_i32_1] : memref<896x256xbf16, #tpu.memory_space<any>> -> memref<128x256xbf16, #tpu.memory_space<any>>
    %c0_i32_2 = arith.constant 0 : i32
    %c0_i32_3 = arith.constant 0 : i32
    %1 = tpu.memref_slice %arg6[%c0_i32_2, %c0_i32_3] : memref<896x256xbf16, #tpu.memory_space<vmem>> -> memref<128x256xbf16, #tpu.memory_space<vmem>>
    %2 = tpu.memref_slice %arg7[%c0_i32] : memref<7x!tpu.dma_semaphore, #tpu.memory_space<semaphore_mem>> -> memref<1x!tpu.dma_semaphore, #tpu.memory_space<semaphore_mem>>
    %3 = tpu.memref_squeeze %2 : memref<1x!tpu.dma_semaphore, #tpu.memory_space<semaphore_mem>> -> memref<!tpu.dma_semaphore, #tpu.memory_space<semaphore_mem>>
    tpu.enqueue_dma source(%0 : memref<128x256xbf16, #tpu.memory_space<any>>) target(%1 : memref<128x256xbf16, #tpu.memory_space<vmem>>) target_semaphore(%3 : memref<!tpu.dma_semaphore, #tpu.memory_space<semaphore_mem>>)
    %c1_i32 = arith.constant 1 : i32
    %c0_i32_4 = arith.constant 0 : i32
    %c0_i32_5 = arith.constant 0 : i32
    %4 = tpu.memref_slice %arg2[%c0_i32_4, %c0_i32_5] : memref<512x128xbf16, #tpu.memory_space<any>> -> memref<256x128xbf16, #tpu.memory_space<any>>
    %c0_i32_6 = arith.constant 0 : i32
    %c0_i32_7 = arith.constant 0 : i32
    %5 = tpu.memref_slice %arg5[%c0_i32_6, %c0_i32_7] : memref<512x128xbf16, #tpu.memory_space<vmem>> -> memref<256x128xbf16, #tpu.memory_space<vmem>>
    %6 = tpu.memref_slice %arg7[%c1_i32] : memref<7x!tpu.dma_semaphore, #tpu.memory_space<semaphore_mem>> -> memref<1x!tpu.dma_semaphore, #tpu.memory_space<semaphore_mem>>
    %7 = tpu.memref_squeeze %6 : memref<1x!tpu.dma_semaphore, #tpu.memory_space<semaphore_mem>> -> memref<!tpu.dma_semaphore, #tpu.memory_space<semaphore_mem>>
    tpu.enqueue_dma source(%4 : memref<256x128xbf16, #tpu.memory_space<any>>) target(%5 : memref<256x128xbf16, #tpu.memory_space<vmem>>) target_semaphore(%7 : memref<!tpu.dma_semaphore, #tpu.memory_space<semaphore_mem>>)
    %c2_i32 = arith.constant 2 : i32
    %c256_i32 = arith.constant 256 : i32
    %c0_i32_8 = arith.constant 0 : i32
    %8 = tpu.memref_slice %arg2[%c256_i32, %c0_i32_8] : memref<512x128xbf16, #tpu.memory_space<any>> -> memref<128x128xbf16, #tpu.memory_space<any>>
    %c256_i32_9 = arith.constant 256 : i32
    %c0_i32_10 = arith.constant 0 : i32
    %9 = tpu.memref_slice %arg5[%c256_i32_9, %c0_i32_10] : memref<512x128xbf16, #tpu.memory_space<vmem>> -> memref<128x128xbf16, #tpu.memory_space<vmem>>
    %10 = tpu.memref_slice %arg7[%c2_i32] : memref<7x!tpu.dma_semaphore, #tpu.memory_space<semaphore_mem>> -> memref<1x!tpu.dma_semaphore, #tpu.memory_space<semaphore_mem>>
    %11 = tpu.memref_squeeze %10 : memref<1x!tpu.dma_semaphore, #tpu.memory_space<semaphore_mem>> -> memref<!tpu.dma_semaphore, #tpu.memory_space<semaphore_mem>>
    tpu.enqueue_dma source(%8 : memref<128x128xbf16, #tpu.memory_space<any>>) target(%9 : memref<128x128xbf16, #tpu.memory_space<vmem>>) target_semaphore(%11 : memref<!tpu.dma_semaphore, #tpu.memory_space<semaphore_mem>>)
    %c3_i32 = arith.constant 3 : i32
    %c384_i32 = arith.constant 384 : i32
    %c0_i32_11 = arith.constant 0 : i32
    %12 = tpu.memref_slice %arg2[%c384_i32, %c0_i32_11] : memref<512x128xbf16, #tpu.memory_space<any>> -> memref<128x128xbf16, #tpu.memory_space<any>>
    %c384_i32_12 = arith.constant 384 : i32
    %c0_i32_13 = arith.constant 0 : i32
    %13 = tpu.memref_slice %arg5[%c384_i32_12, %c0_i32_13] : memref<512x128xbf16, #tpu.memory_space<vmem>> -> memref<128x128xbf16, #tpu.memory_space<vmem>>
    %14 = tpu.memref_slice %arg7[%c3_i32] : memref<7x!tpu.dma_semaphore, #tpu.memory_space<semaphore_mem>> -> memref<1x!tpu.dma_semaphore, #tpu.memory_space<semaphore_mem>>
    %15 = tpu.memref_squeeze %14 : memref<1x!tpu.dma_semaphore, #tpu.memory_space<semaphore_mem>> -> memref<!tpu.dma_semaphore, #tpu.memory_space<semaphore_mem>>
    tpu.enqueue_dma source(%12 : memref<128x128xbf16, #tpu.memory_space<any>>) target(%13 : memref<128x128xbf16, #tpu.memory_space<vmem>>) target_semaphore(%15 : memref<!tpu.dma_semaphore, #tpu.memory_space<semaphore_mem>>)
    %c4_i32 = arith.constant 4 : i32
    %c128_i32 = arith.constant 128 : i32
    %c0_i32_14 = arith.constant 0 : i32
    %16 = tpu.memref_slice %arg3[%c128_i32, %c0_i32_14] : memref<896x256xbf16, #tpu.memory_space<any>> -> memref<128x256xbf16, #tpu.memory_space<any>>
    %c128_i32_15 = arith.constant 128 : i32
    %c0_i32_16 = arith.constant 0 : i32
    %17 = tpu.memref_slice %arg6[%c128_i32_15, %c0_i32_16] : memref<896x256xbf16, #tpu.memory_space<vmem>> -> memref<128x256xbf16, #tpu.memory_space<vmem>>
    %18 = tpu.memref_slice %arg7[%c4_i32] : memref<7x!tpu.dma_semaphore, #tpu.memory_space<semaphore_mem>> -> memref<1x!tpu.dma_semaphore, #tpu.memory_space<semaphore_mem>>
    %19 = tpu.memref_squeeze %18 : memref<1x!tpu.dma_semaphore, #tpu.memory_space<semaphore_mem>> -> memref<!tpu.dma_semaphore, #tpu.memory_space<semaphore_mem>>
    tpu.enqueue_dma source(%16 : memref<128x256xbf16, #tpu.memory_space<any>>) target(%17 : memref<128x256xbf16, #tpu.memory_space<vmem>>) target_semaphore(%19 : memref<!tpu.dma_semaphore, #tpu.memory_space<semaphore_mem>>)
    %c5_i32 = arith.constant 5 : i32
    %c256_i32_17 = arith.constant 256 : i32
    %c0_i32_18 = arith.constant 0 : i32
    %20 = tpu.memref_slice %arg3[%c256_i32_17, %c0_i32_18] : memref<896x256xbf16, #tpu.memory_space<any>> -> memref<384x256xbf16, #tpu.memory_space<any>>
    %c256_i32_19 = arith.constant 256 : i32
    %c0_i32_20 = arith.constant 0 : i32
    %21 = tpu.memref_slice %arg6[%c256_i32_19, %c0_i32_20] : memref<896x256xbf16, #tpu.memory_space<vmem>> -> memref<384x256xbf16, #tpu.memory_space<vmem>>
    %22 = tpu.memref_slice %arg7[%c5_i32] : memref<7x!tpu.dma_semaphore, #tpu.memory_space<semaphore_mem>> -> memref<1x!tpu.dma_semaphore, #tpu.memory_space<semaphore_mem>>
    %23 = tpu.memref_squeeze %22 : memref<1x!tpu.dma_semaphore, #tpu.memory_space<semaphore_mem>> -> memref<!tpu.dma_semaphore, #tpu.memory_space<semaphore_mem>>
    tpu.enqueue_dma source(%20 : memref<384x256xbf16, #tpu.memory_space<any>>) target(%21 : memref<384x256xbf16, #tpu.memory_space<vmem>>) target_semaphore(%23 : memref<!tpu.dma_semaphore, #tpu.memory_space<semaphore_mem>>)
    %c6_i32 = arith.constant 6 : i32
    %c640_i32 = arith.constant 640 : i32
    %c0_i32_21 = arith.constant 0 : i32
    %24 = tpu.memref_slice %arg3[%c640_i32, %c0_i32_21] : memref<896x256xbf16, #tpu.memory_space<any>> -> memref<256x256xbf16, #tpu.memory_space<any>>
    %c640_i32_22 = arith.constant 640 : i32
    %c0_i32_23 = arith.constant 0 : i32
    %25 = tpu.memref_slice %arg6[%c640_i32_22, %c0_i32_23] : memref<896x256xbf16, #tpu.memory_space<vmem>> -> memref<256x256xbf16, #tpu.memory_space<vmem>>
    %26 = tpu.memref_slice %arg7[%c6_i32] : memref<7x!tpu.dma_semaphore, #tpu.memory_space<semaphore_mem>> -> memref<1x!tpu.dma_semaphore, #tpu.memory_space<semaphore_mem>>
    %27 = tpu.memref_squeeze %26 : memref<1x!tpu.dma_semaphore, #tpu.memory_space<semaphore_mem>> -> memref<!tpu.dma_semaphore, #tpu.memory_space<semaphore_mem>>
    tpu.enqueue_dma source(%24 : memref<256x256xbf16, #tpu.memory_space<any>>) target(%25 : memref<256x256xbf16, #tpu.memory_space<vmem>>) target_semaphore(%27 : memref<!tpu.dma_semaphore, #tpu.memory_space<semaphore_mem>>)
    %c0 = arith.constant 0 : index
    %c0_24 = arith.constant 0 : index
    %28 = vector.load %arg1[%c0, %c0_24] : memref<15x256xf32, #tpu.memory_space<vmem>>, vector<15x256xf32>
    %29 = vector.extract_strided_slice %28 {offsets = [0, 0], sizes = [1, 256], strides = [1, 1]} : vector<15x256xf32> to vector<1x256xf32>
    %30 = vector.extract_strided_slice %28 {offsets = [1, 0], sizes = [1, 256], strides = [1, 1]} : vector<15x256xf32> to vector<1x256xf32>
    %31 = vector.extract_strided_slice %28 {offsets = [2, 0], sizes = [1, 256], strides = [1, 1]} : vector<15x256xf32> to vector<1x256xf32>
    %32 = vector.extract_strided_slice %28 {offsets = [3, 0], sizes = [1, 256], strides = [1, 1]} : vector<15x256xf32> to vector<1x256xf32>
    %33 = vector.extract_strided_slice %28 {offsets = [4, 0], sizes = [1, 256], strides = [1, 1]} : vector<15x256xf32> to vector<1x256xf32>
    %34 = vector.extract_strided_slice %28 {offsets = [5, 0], sizes = [1, 256], strides = [1, 1]} : vector<15x256xf32> to vector<1x256xf32>
    %35 = vector.extract_strided_slice %28 {offsets = [6, 0], sizes = [1, 256], strides = [1, 1]} : vector<15x256xf32> to vector<1x256xf32>
    %36 = vector.extract_strided_slice %28 {offsets = [7, 0], sizes = [1, 256], strides = [1, 1]} : vector<15x256xf32> to vector<1x256xf32>
    %37 = vector.extract_strided_slice %28 {offsets = [8, 0], sizes = [1, 256], strides = [1, 1]} : vector<15x256xf32> to vector<1x256xf32>
    %38 = vector.extract_strided_slice %28 {offsets = [9, 0], sizes = [1, 256], strides = [1, 1]} : vector<15x256xf32> to vector<1x256xf32>
    %39 = vector.extract_strided_slice %28 {offsets = [10, 0], sizes = [1, 128], strides = [1, 1]} : vector<15x256xf32> to vector<1x128xf32>
    %40 = vector.extract_strided_slice %28 {offsets = [11, 0], sizes = [1, 128], strides = [1, 1]} : vector<15x256xf32> to vector<1x128xf32>
    %41 = vector.extract_strided_slice %28 {offsets = [12, 0], sizes = [1, 128], strides = [1, 1]} : vector<15x256xf32> to vector<1x128xf32>
    %42 = vector.extract_strided_slice %28 {offsets = [13, 0], sizes = [1, 128], strides = [1, 1]} : vector<15x256xf32> to vector<1x128xf32>
    %43 = vector.extract_strided_slice %28 {offsets = [14, 0], sizes = [1, 128], strides = [1, 1]} : vector<15x256xf32> to vector<1x128xf32>
    %c0_25 = arith.constant 0 : index
    %c0_26 = arith.constant 0 : index
    %44 = vector.load %arg0[%c0_25, %c0_26] : memref<16x128xf32, #tpu.memory_space<vmem>>, vector<16x128xf32>
    %c0_i32_27 = arith.constant 0 : i32
    %c0_i32_28 = arith.constant 0 : i32
    %c0_i32_29 = arith.constant 0 : i32
    %45 = tpu.memref_slice %arg3[%c0_i32_28, %c0_i32_29] : memref<896x256xbf16, #tpu.memory_space<any>> -> memref<128x256xbf16, #tpu.memory_space<any>>
    %c0_i32_30 = arith.constant 0 : i32
    %c0_i32_31 = arith.constant 0 : i32
    %46 = tpu.memref_slice %arg6[%c0_i32_30, %c0_i32_31] : memref<896x256xbf16, #tpu.memory_space<vmem>> -> memref<128x256xbf16, #tpu.memory_space<vmem>>
    %47 = tpu.memref_slice %arg7[%c0_i32_27] : memref<7x!tpu.dma_semaphore, #tpu.memory_space<semaphore_mem>> -> memref<1x!tpu.dma_semaphore, #tpu.memory_space<semaphore_mem>>
    %48 = tpu.memref_squeeze %47 : memref<1x!tpu.dma_semaphore, #tpu.memory_space<semaphore_mem>> -> memref<!tpu.dma_semaphore, #tpu.memory_space<semaphore_mem>>
    tpu.wait_dma2 semaphore(%48 : memref<!tpu.dma_semaphore, #tpu.memory_space<semaphore_mem>>) src(%45 : memref<128x256xbf16, #tpu.memory_space<any>>) dst(%46 : memref<128x256xbf16, #tpu.memory_space<vmem>>)
    %c0_32 = arith.constant 0 : index
    %c0_33 = arith.constant 0 : index
    %49 = vector.load %arg6[%c0_32, %c0_33] : memref<896x256xbf16, #tpu.memory_space<vmem>>, vector<128x256xbf16>
    %50 = arith.truncf %44 : vector<16x128xf32> to vector<16x128xbf16>
    %cst = arith.constant dense<0.000000e+00> : vector<16x256xf32>
    %51 = tpu.matmul %50, %49, %cst {dimension_numbers = #tpu.dot_dimension_numbers<[1], [0], [0], [1], [0, 0, 1, 1], [], []>} : vector<16x128xbf16>, vector<128x256xbf16>, vector<16x256xf32> -> vector<16x256xf32>
    %52 = vector.broadcast %29 : vector<1x256xf32> to vector<16x256xf32>
    %53 = arith.addf %51, %52 : vector<16x256xf32>
    %cst_34 = arith.constant dense<0.000000e+00> : vector<16xf32>
    %54 = vector.multi_reduction <add>, %53, %cst_34 [1] : vector<16x256xf32> to vector<16xf32>
    %55 = vector.shape_cast %54 : vector<16xf32> to vector<16x1xf32>
    %cst_35 = arith.constant 3.906250e-03 : f32
    %56 = vector.broadcast %cst_35 : f32 to vector<16x1xf32>
    %57 = arith.mulf %55, %56 : vector<16x1xf32>
    %58 = arith.mulf %53, %53 : vector<16x256xf32>
    %cst_36 = arith.constant dense<0.000000e+00> : vector<16xf32>
    %59 = vector.multi_reduction <add>, %58, %cst_36 [1] : vector<16x256xf32> to vector<16xf32>
    %60 = vector.shape_cast %59 : vector<16xf32> to vector<16x1xf32>
    %cst_37 = arith.constant 3.906250e-03 : f32
    %61 = vector.broadcast %cst_37 : f32 to vector<16x1xf32>
    %62 = arith.mulf %60, %61 : vector<16x1xf32>
    %63 = arith.mulf %57, %57 : vector<16x1xf32>
    %64 = arith.subf %62, %63 : vector<16x1xf32>
    %65 = vector.broadcast %57 : vector<16x1xf32> to vector<16x256xf32>
    %66 = arith.subf %53, %65 : vector<16x256xf32>
    %cst_38 = arith.constant 9.99999974E-6 : f32
    %67 = vector.broadcast %cst_38 : f32 to vector<16x1xf32>
    %68 = arith.addf %64, %67 : vector<16x1xf32>
    %69 = math.rsqrt %68 : vector<16x1xf32>
    %70 = vector.broadcast %69 : vector<16x1xf32> to vector<16x256xf32>
    %71 = arith.mulf %66, %70 : vector<16x256xf32>
    %72 = vector.broadcast %30 : vector<1x256xf32> to vector<16x256xf32>
    %73 = arith.mulf %71, %72 : vector<16x256xf32>
    %74 = vector.broadcast %31 : vector<1x256xf32> to vector<16x256xf32>
    %75 = arith.addf %73, %74 : vector<16x256xf32>
    %cst_39 = arith.constant 5.000000e-01 : f32
    %76 = vector.broadcast %cst_39 : f32 to vector<16x256xf32>
    %77 = arith.mulf %76, %75 : vector<16x256xf32>
    %cst_40 = arith.constant 4.471500e-02 : f32
    %78 = vector.broadcast %cst_40 : f32 to vector<16x256xf32>
    %79 = arith.mulf %78, %75 : vector<16x256xf32>
    %80 = arith.mulf %79, %75 : vector<16x256xf32>
    %81 = arith.mulf %80, %75 : vector<16x256xf32>
    %82 = arith.addf %75, %81 : vector<16x256xf32>
    %cst_41 = arith.constant 0.797884583 : f32
    %83 = vector.broadcast %cst_41 : f32 to vector<16x256xf32>
    %84 = arith.mulf %83, %82 : vector<16x256xf32>
    %85 = math.tanh %84 : vector<16x256xf32>
    %cst_42 = arith.constant 1.000000e+00 : f32
    %86 = vector.broadcast %cst_42 : f32 to vector<16x256xf32>
    %87 = arith.addf %86, %85 : vector<16x256xf32>
    %88 = arith.mulf %77, %87 : vector<16x256xf32>
    %c1_i32_43 = arith.constant 1 : i32
    %c0_i32_44 = arith.constant 0 : i32
    %c0_i32_45 = arith.constant 0 : i32
    %89 = tpu.memref_slice %arg2[%c0_i32_44, %c0_i32_45] : memref<512x128xbf16, #tpu.memory_space<any>> -> memref<256x128xbf16, #tpu.memory_space<any>>
    %c0_i32_46 = arith.constant 0 : i32
    %c0_i32_47 = arith.constant 0 : i32
    %90 = tpu.memref_slice %arg5[%c0_i32_46, %c0_i32_47] : memref<512x128xbf16, #tpu.memory_space<vmem>> -> memref<256x128xbf16, #tpu.memory_space<vmem>>
    %91 = tpu.memref_slice %arg7[%c1_i32_43] : memref<7x!tpu.dma_semaphore, #tpu.memory_space<semaphore_mem>> -> memref<1x!tpu.dma_semaphore, #tpu.memory_space<semaphore_mem>>
    %92 = tpu.memref_squeeze %91 : memref<1x!tpu.dma_semaphore, #tpu.memory_space<semaphore_mem>> -> memref<!tpu.dma_semaphore, #tpu.memory_space<semaphore_mem>>
    tpu.wait_dma2 semaphore(%92 : memref<!tpu.dma_semaphore, #tpu.memory_space<semaphore_mem>>) src(%89 : memref<256x128xbf16, #tpu.memory_space<any>>) dst(%90 : memref<256x128xbf16, #tpu.memory_space<vmem>>)
    %c0_48 = arith.constant 0 : index
    %c0_49 = arith.constant 0 : index
    %93 = vector.load %arg5[%c0_48, %c0_49] : memref<512x128xbf16, #tpu.memory_space<vmem>>, vector<256x128xbf16>
    %94 = arith.truncf %88 : vector<16x256xf32> to vector<16x256xbf16>
    %cst_50 = arith.constant dense<0.000000e+00> : vector<16x128xf32>
    %95 = tpu.matmul %94, %93, %cst_50 {dimension_numbers = #tpu.dot_dimension_numbers<[1], [0], [0], [1], [0, 0, 1, 1], [], []>} : vector<16x256xbf16>, vector<256x128xbf16>, vector<16x128xf32> -> vector<16x128xf32>
    %96 = vector.broadcast %39 : vector<1x128xf32> to vector<16x128xf32>
    %97 = arith.addf %95, %96 : vector<16x128xf32>
    %cst_51 = arith.constant dense<0.000000e+00> : vector<16xf32>
    %98 = vector.multi_reduction <add>, %97, %cst_51 [1] : vector<16x128xf32> to vector<16xf32>
    %99 = vector.shape_cast %98 : vector<16xf32> to vector<16x1xf32>
    %cst_52 = arith.constant 7.812500e-03 : f32
    %100 = vector.broadcast %cst_52 : f32 to vector<16x1xf32>
    %101 = arith.mulf %99, %100 : vector<16x1xf32>
    %102 = arith.mulf %97, %97 : vector<16x128xf32>
    %cst_53 = arith.constant dense<0.000000e+00> : vector<16xf32>
    %103 = vector.multi_reduction <add>, %102, %cst_53 [1] : vector<16x128xf32> to vector<16xf32>
    %104 = vector.shape_cast %103 : vector<16xf32> to vector<16x1xf32>
    %cst_54 = arith.constant 7.812500e-03 : f32
    %105 = vector.broadcast %cst_54 : f32 to vector<16x1xf32>
    %106 = arith.mulf %104, %105 : vector<16x1xf32>
    %107 = arith.mulf %101, %101 : vector<16x1xf32>
    %108 = arith.subf %106, %107 : vector<16x1xf32>
    %109 = vector.broadcast %101 : vector<16x1xf32> to vector<16x128xf32>
    %110 = arith.subf %97, %109 : vector<16x128xf32>
    %cst_55 = arith.constant 9.99999974E-6 : f32
    %111 = vector.broadcast %cst_55 : f32 to vector<16x1xf32>
    %112 = arith.addf %108, %111 : vector<16x1xf32>
    %113 = math.rsqrt %112 : vector<16x1xf32>
    %114 = vector.broadcast %113 : vector<16x1xf32> to vector<16x128xf32>
    %115 = arith.mulf %110, %114 : vector<16x128xf32>
    %116 = vector.broadcast %40 : vector<1x128xf32> to vector<16x128xf32>
    %117 = arith.mulf %115, %116 : vector<16x128xf32>
    %118 = vector.broadcast %41 : vector<1x128xf32> to vector<16x128xf32>
    %119 = arith.addf %117, %118 : vector<16x128xf32>
    %c2_i32_56 = arith.constant 2 : i32
    %c256_i32_57 = arith.constant 256 : i32
    %c0_i32_58 = arith.constant 0 : i32
    %120 = tpu.memref_slice %arg2[%c256_i32_57, %c0_i32_58] : memref<512x128xbf16, #tpu.memory_space<any>> -> memref<128x128xbf16, #tpu.memory_space<any>>
    %c256_i32_59 = arith.constant 256 : i32
    %c0_i32_60 = arith.constant 0 : i32
    %121 = tpu.memref_slice %arg5[%c256_i32_59, %c0_i32_60] : memref<512x128xbf16, #tpu.memory_space<vmem>> -> memref<128x128xbf16, #tpu.memory_space<vmem>>
    %122 = tpu.memref_slice %arg7[%c2_i32_56] : memref<7x!tpu.dma_semaphore, #tpu.memory_space<semaphore_mem>> -> memref<1x!tpu.dma_semaphore, #tpu.memory_space<semaphore_mem>>
    %123 = tpu.memref_squeeze %122 : memref<1x!tpu.dma_semaphore, #tpu.memory_space<semaphore_mem>> -> memref<!tpu.dma_semaphore, #tpu.memory_space<semaphore_mem>>
    tpu.wait_dma2 semaphore(%123 : memref<!tpu.dma_semaphore, #tpu.memory_space<semaphore_mem>>) src(%120 : memref<128x128xbf16, #tpu.memory_space<any>>) dst(%121 : memref<128x128xbf16, #tpu.memory_space<vmem>>)
    %c256 = arith.constant 256 : index
    %c0_61 = arith.constant 0 : index
    %124 = vector.load %arg5[%c256, %c0_61] : memref<512x128xbf16, #tpu.memory_space<vmem>>, vector<128x128xbf16>
    %125 = arith.truncf %119 : vector<16x128xf32> to vector<16x128xbf16>
    %cst_62 = arith.constant dense<0.000000e+00> : vector<16x128xf32>
    %126 = tpu.matmul %125, %124, %cst_62 {dimension_numbers = #tpu.dot_dimension_numbers<[1], [0], [0], [1], [0, 0, 1, 1], [], []>} : vector<16x128xbf16>, vector<128x128xbf16>, vector<16x128xf32> -> vector<16x128xf32>
    %127 = vector.broadcast %42 : vector<1x128xf32> to vector<16x128xf32>
    %128 = arith.addf %126, %127 : vector<16x128xf32>
    %c3_i32_63 = arith.constant 3 : i32
    %c384_i32_64 = arith.constant 384 : i32
    %c0_i32_65 = arith.constant 0 : i32
    %129 = tpu.memref_slice %arg2[%c384_i32_64, %c0_i32_65] : memref<512x128xbf16, #tpu.memory_space<any>> -> memref<128x128xbf16, #tpu.memory_space<any>>
    %c384_i32_66 = arith.constant 384 : i32
    %c0_i32_67 = arith.constant 0 : i32
    %130 = tpu.memref_slice %arg5[%c384_i32_66, %c0_i32_67] : memref<512x128xbf16, #tpu.memory_space<vmem>> -> memref<128x128xbf16, #tpu.memory_space<vmem>>
    %131 = tpu.memref_slice %arg7[%c3_i32_63] : memref<7x!tpu.dma_semaphore, #tpu.memory_space<semaphore_mem>> -> memref<1x!tpu.dma_semaphore, #tpu.memory_space<semaphore_mem>>
    %132 = tpu.memref_squeeze %131 : memref<1x!tpu.dma_semaphore, #tpu.memory_space<semaphore_mem>> -> memref<!tpu.dma_semaphore, #tpu.memory_space<semaphore_mem>>
    tpu.wait_dma2 semaphore(%132 : memref<!tpu.dma_semaphore, #tpu.memory_space<semaphore_mem>>) src(%129 : memref<128x128xbf16, #tpu.memory_space<any>>) dst(%130 : memref<128x128xbf16, #tpu.memory_space<vmem>>)
    %c384 = arith.constant 384 : index
    %c0_68 = arith.constant 0 : index
    %133 = vector.load %arg5[%c384, %c0_68] : memref<512x128xbf16, #tpu.memory_space<vmem>>, vector<128x128xbf16>
    %134 = arith.truncf %128 : vector<16x128xf32> to vector<16x128xbf16>
    %cst_69 = arith.constant dense<0.000000e+00> : vector<16x128xf32>
    %135 = tpu.matmul %134, %133, %cst_69 {dimension_numbers = #tpu.dot_dimension_numbers<[1], [0], [0], [1], [0, 0, 1, 1], [], []>} : vector<16x128xbf16>, vector<128x128xbf16>, vector<16x128xf32> -> vector<16x128xf32>
    %136 = vector.broadcast %43 : vector<1x128xf32> to vector<16x128xf32>
    %137 = arith.addf %135, %136 : vector<16x128xf32>
    %138 = arith.negf %137 : vector<16x128xf32>
    %139 = math.exp %138 : vector<16x128xf32>
    %cst_70 = arith.constant 1.000000e+00 : f32
    %140 = vector.broadcast %cst_70 : f32 to vector<16x128xf32>
    %141 = arith.addf %140, %139 : vector<16x128xf32>
    %142 = arith.divf %140, %141 : vector<16x128xf32>
    %143 = arith.mulf %128, %142 : vector<16x128xf32>
    %c4_i32_71 = arith.constant 4 : i32
    %c128_i32_72 = arith.constant 128 : i32
    %c0_i32_73 = arith.constant 0 : i32
    %144 = tpu.memref_slice %arg3[%c128_i32_72, %c0_i32_73] : memref<896x256xbf16, #tpu.memory_space<any>> -> memref<128x256xbf16, #tpu.memory_space<any>>
    %c128_i32_74 = arith.constant 128 : i32
    %c0_i32_75 = arith.constant 0 : i32
    %145 = tpu.memref_slice %arg6[%c128_i32_74, %c0_i32_75] : memref<896x256xbf16, #tpu.memory_space<vmem>> -> memref<128x256xbf16, #tpu.memory_space<vmem>>
    %146 = tpu.memref_slice %arg7[%c4_i32_71] : memref<7x!tpu.dma_semaphore, #tpu.memory_space<semaphore_mem>> -> memref<1x!tpu.dma_semaphore, #tpu.memory_space<semaphore_mem>>
    %147 = tpu.memref_squeeze %146 : memref<1x!tpu.dma_semaphore, #tpu.memory_space<semaphore_mem>> -> memref<!tpu.dma_semaphore, #tpu.memory_space<semaphore_mem>>
    tpu.wait_dma2 semaphore(%147 : memref<!tpu.dma_semaphore, #tpu.memory_space<semaphore_mem>>) src(%144 : memref<128x256xbf16, #tpu.memory_space<any>>) dst(%145 : memref<128x256xbf16, #tpu.memory_space<vmem>>)
    %c128 = arith.constant 128 : index
    %c0_76 = arith.constant 0 : index
    %148 = vector.load %arg6[%c128, %c0_76] : memref<896x256xbf16, #tpu.memory_space<vmem>>, vector<128x256xbf16>
    %149 = arith.truncf %143 : vector<16x128xf32> to vector<16x128xbf16>
    %cst_77 = arith.constant dense<0.000000e+00> : vector<16x256xf32>
    %150 = tpu.matmul %149, %148, %cst_77 {dimension_numbers = #tpu.dot_dimension_numbers<[1], [0], [0], [1], [0, 0, 1, 1], [], []>} : vector<16x128xbf16>, vector<128x256xbf16>, vector<16x256xf32> -> vector<16x256xf32>
    %151 = vector.broadcast %32 : vector<1x256xf32> to vector<16x256xf32>
    %152 = arith.addf %150, %151 : vector<16x256xf32>
    %153 = vector.extract_strided_slice %152 {offsets = [0, 0], sizes = [16, 128], strides = [1, 1]} : vector<16x256xf32> to vector<16x128xf32>
    %154 = vector.extract_strided_slice %33 {offsets = [0, 0], sizes = [1, 128], strides = [1, 1]} : vector<1x256xf32> to vector<1x128xf32>
    %155 = vector.extract_strided_slice %34 {offsets = [0, 0], sizes = [1, 128], strides = [1, 1]} : vector<1x256xf32> to vector<1x128xf32>
    %cst_78 = arith.constant dense<0.000000e+00> : vector<16xf32>
    %156 = vector.multi_reduction <add>, %153, %cst_78 [1] : vector<16x128xf32> to vector<16xf32>
    %157 = vector.shape_cast %156 : vector<16xf32> to vector<16x1xf32>
    %cst_79 = arith.constant 7.812500e-03 : f32
    %158 = vector.broadcast %cst_79 : f32 to vector<16x1xf32>
    %159 = arith.mulf %157, %158 : vector<16x1xf32>
    %160 = arith.mulf %153, %153 : vector<16x128xf32>
    %cst_80 = arith.constant dense<0.000000e+00> : vector<16xf32>
    %161 = vector.multi_reduction <add>, %160, %cst_80 [1] : vector<16x128xf32> to vector<16xf32>
    %162 = vector.shape_cast %161 : vector<16xf32> to vector<16x1xf32>
    %cst_81 = arith.constant 7.812500e-03 : f32
    %163 = vector.broadcast %cst_81 : f32 to vector<16x1xf32>
    %164 = arith.mulf %162, %163 : vector<16x1xf32>
    %165 = arith.mulf %159, %159 : vector<16x1xf32>
    %166 = arith.subf %164, %165 : vector<16x1xf32>
    %167 = vector.broadcast %159 : vector<16x1xf32> to vector<16x128xf32>
    %168 = arith.subf %153, %167 : vector<16x128xf32>
    %cst_82 = arith.constant 9.99999974E-6 : f32
    %169 = vector.broadcast %cst_82 : f32 to vector<16x1xf32>
    %170 = arith.addf %166, %169 : vector<16x1xf32>
    %171 = math.rsqrt %170 : vector<16x1xf32>
    %172 = vector.broadcast %171 : vector<16x1xf32> to vector<16x128xf32>
    %173 = arith.mulf %168, %172 : vector<16x128xf32>
    %174 = vector.broadcast %154 : vector<1x128xf32> to vector<16x128xf32>
    %175 = arith.mulf %173, %174 : vector<16x128xf32>
    %176 = vector.broadcast %155 : vector<1x128xf32> to vector<16x128xf32>
    %177 = arith.addf %175, %176 : vector<16x128xf32>
    %cst_83 = arith.constant 5.000000e-01 : f32
    %178 = vector.broadcast %cst_83 : f32 to vector<16x128xf32>
    %179 = arith.mulf %178, %177 : vector<16x128xf32>
    %cst_84 = arith.constant 4.471500e-02 : f32
    %180 = vector.broadcast %cst_84 : f32 to vector<16x128xf32>
    %181 = arith.mulf %180, %177 : vector<16x128xf32>
    %182 = arith.mulf %181, %177 : vector<16x128xf32>
    %183 = arith.mulf %182, %177 : vector<16x128xf32>
    %184 = arith.addf %177, %183 : vector<16x128xf32>
    %cst_85 = arith.constant 0.797884583 : f32
    %185 = vector.broadcast %cst_85 : f32 to vector<16x128xf32>
    %186 = arith.mulf %185, %184 : vector<16x128xf32>
    %187 = math.tanh %186 : vector<16x128xf32>
    %cst_86 = arith.constant 1.000000e+00 : f32
    %188 = vector.broadcast %cst_86 : f32 to vector<16x128xf32>
    %189 = arith.addf %188, %187 : vector<16x128xf32>
    %190 = arith.mulf %179, %189 : vector<16x128xf32>
    %191 = vector.extract_strided_slice %152 {offsets = [0, 128], sizes = [16, 128], strides = [1, 1]} : vector<16x256xf32> to vector<16x128xf32>
    %192 = vector.extract_strided_slice %33 {offsets = [0, 128], sizes = [1, 128], strides = [1, 1]} : vector<1x256xf32> to vector<1x128xf32>
    %193 = vector.extract_strided_slice %34 {offsets = [0, 128], sizes = [1, 128], strides = [1, 1]} : vector<1x256xf32> to vector<1x128xf32>
    %cst_87 = arith.constant dense<0.000000e+00> : vector<16xf32>
    %194 = vector.multi_reduction <add>, %191, %cst_87 [1] : vector<16x128xf32> to vector<16xf32>
    %195 = vector.shape_cast %194 : vector<16xf32> to vector<16x1xf32>
    %cst_88 = arith.constant 7.812500e-03 : f32
    %196 = vector.broadcast %cst_88 : f32 to vector<16x1xf32>
    %197 = arith.mulf %195, %196 : vector<16x1xf32>
    %198 = arith.mulf %191, %191 : vector<16x128xf32>
    %cst_89 = arith.constant dense<0.000000e+00> : vector<16xf32>
    %199 = vector.multi_reduction <add>, %198, %cst_89 [1] : vector<16x128xf32> to vector<16xf32>
    %200 = vector.shape_cast %199 : vector<16xf32> to vector<16x1xf32>
    %cst_90 = arith.constant 7.812500e-03 : f32
    %201 = vector.broadcast %cst_90 : f32 to vector<16x1xf32>
    %202 = arith.mulf %200, %201 : vector<16x1xf32>
    %203 = arith.mulf %197, %197 : vector<16x1xf32>
    %204 = arith.subf %202, %203 : vector<16x1xf32>
    %205 = vector.broadcast %197 : vector<16x1xf32> to vector<16x128xf32>
    %206 = arith.subf %191, %205 : vector<16x128xf32>
    %cst_91 = arith.constant 9.99999974E-6 : f32
    %207 = vector.broadcast %cst_91 : f32 to vector<16x1xf32>
    %208 = arith.addf %204, %207 : vector<16x1xf32>
    %209 = math.rsqrt %208 : vector<16x1xf32>
    %210 = vector.broadcast %209 : vector<16x1xf32> to vector<16x128xf32>
    %211 = arith.mulf %206, %210 : vector<16x128xf32>
    %212 = vector.broadcast %192 : vector<1x128xf32> to vector<16x128xf32>
    %213 = arith.mulf %211, %212 : vector<16x128xf32>
    %214 = vector.broadcast %193 : vector<1x128xf32> to vector<16x128xf32>
    %215 = arith.addf %213, %214 : vector<16x128xf32>
    %cst_92 = arith.constant 5.000000e-01 : f32
    %216 = vector.broadcast %cst_92 : f32 to vector<16x128xf32>
    %217 = arith.mulf %216, %215 : vector<16x128xf32>
    %cst_93 = arith.constant 4.471500e-02 : f32
    %218 = vector.broadcast %cst_93 : f32 to vector<16x128xf32>
    %219 = arith.mulf %218, %215 : vector<16x128xf32>
    %220 = arith.mulf %219, %215 : vector<16x128xf32>
    %221 = arith.mulf %220, %215 : vector<16x128xf32>
    %222 = arith.addf %215, %221 : vector<16x128xf32>
    %cst_94 = arith.constant 0.797884583 : f32
    %223 = vector.broadcast %cst_94 : f32 to vector<16x128xf32>
    %224 = arith.mulf %223, %222 : vector<16x128xf32>
    %225 = math.tanh %224 : vector<16x128xf32>
    %cst_95 = arith.constant 1.000000e+00 : f32
    %226 = vector.broadcast %cst_95 : f32 to vector<16x128xf32>
    %227 = arith.addf %226, %225 : vector<16x128xf32>
    %228 = arith.mulf %217, %227 : vector<16x128xf32>
    %c5_i32_96 = arith.constant 5 : i32
    %c256_i32_97 = arith.constant 256 : i32
    %c0_i32_98 = arith.constant 0 : i32
    %229 = tpu.memref_slice %arg3[%c256_i32_97, %c0_i32_98] : memref<896x256xbf16, #tpu.memory_space<any>> -> memref<384x256xbf16, #tpu.memory_space<any>>
    %c256_i32_99 = arith.constant 256 : i32
    %c0_i32_100 = arith.constant 0 : i32
    %230 = tpu.memref_slice %arg6[%c256_i32_99, %c0_i32_100] : memref<896x256xbf16, #tpu.memory_space<vmem>> -> memref<384x256xbf16, #tpu.memory_space<vmem>>
    %231 = tpu.memref_slice %arg7[%c5_i32_96] : memref<7x!tpu.dma_semaphore, #tpu.memory_space<semaphore_mem>> -> memref<1x!tpu.dma_semaphore, #tpu.memory_space<semaphore_mem>>
    %232 = tpu.memref_squeeze %231 : memref<1x!tpu.dma_semaphore, #tpu.memory_space<semaphore_mem>> -> memref<!tpu.dma_semaphore, #tpu.memory_space<semaphore_mem>>
    tpu.wait_dma2 semaphore(%232 : memref<!tpu.dma_semaphore, #tpu.memory_space<semaphore_mem>>) src(%229 : memref<384x256xbf16, #tpu.memory_space<any>>) dst(%230 : memref<384x256xbf16, #tpu.memory_space<vmem>>)
    %233 = arith.truncf %143 : vector<16x128xf32> to vector<16x128xbf16>
    %c256_101 = arith.constant 256 : index
    %c0_102 = arith.constant 0 : index
    %234 = vector.load %arg6[%c256_101, %c0_102] : memref<896x256xbf16, #tpu.memory_space<vmem>>, vector<128x256xbf16>
    %cst_103 = arith.constant dense<0.000000e+00> : vector<16x256xf32>
    %235 = tpu.matmul %233, %234, %cst_103 {dimension_numbers = #tpu.dot_dimension_numbers<[1], [0], [0], [1], [0, 0, 1, 1], [], []>} : vector<16x128xbf16>, vector<128x256xbf16>, vector<16x256xf32> -> vector<16x256xf32>
    %236 = arith.truncf %190 : vector<16x128xf32> to vector<16x128xbf16>
    %c384_104 = arith.constant 384 : index
    %c0_105 = arith.constant 0 : index
    %237 = vector.load %arg6[%c384_104, %c0_105] : memref<896x256xbf16, #tpu.memory_space<vmem>>, vector<128x256xbf16>
    %cst_106 = arith.constant dense<0.000000e+00> : vector<16x256xf32>
    %238 = tpu.matmul %236, %237, %cst_106 {dimension_numbers = #tpu.dot_dimension_numbers<[1], [0], [0], [1], [0, 0, 1, 1], [], []>} : vector<16x128xbf16>, vector<128x256xbf16>, vector<16x256xf32> -> vector<16x256xf32>
    %239 = arith.addf %235, %238 : vector<16x256xf32>
    %240 = arith.truncf %228 : vector<16x128xf32> to vector<16x128xbf16>
    %c512 = arith.constant 512 : index
    %c0_107 = arith.constant 0 : index
    %241 = vector.load %arg6[%c512, %c0_107] : memref<896x256xbf16, #tpu.memory_space<vmem>>, vector<128x256xbf16>
    %cst_108 = arith.constant dense<0.000000e+00> : vector<16x256xf32>
    %242 = tpu.matmul %240, %241, %cst_108 {dimension_numbers = #tpu.dot_dimension_numbers<[1], [0], [0], [1], [0, 0, 1, 1], [], []>} : vector<16x128xbf16>, vector<128x256xbf16>, vector<16x256xf32> -> vector<16x256xf32>
    %243 = arith.addf %239, %242 : vector<16x256xf32>
    %244 = vector.broadcast %35 : vector<1x256xf32> to vector<16x256xf32>
    %245 = arith.addf %243, %244 : vector<16x256xf32>
    %cst_109 = arith.constant dense<0.000000e+00> : vector<16xf32>
    %246 = vector.multi_reduction <add>, %245, %cst_109 [1] : vector<16x256xf32> to vector<16xf32>
    %247 = vector.shape_cast %246 : vector<16xf32> to vector<16x1xf32>
    %cst_110 = arith.constant 3.906250e-03 : f32
    %248 = vector.broadcast %cst_110 : f32 to vector<16x1xf32>
    %249 = arith.mulf %247, %248 : vector<16x1xf32>
    %250 = arith.mulf %245, %245 : vector<16x256xf32>
    %cst_111 = arith.constant dense<0.000000e+00> : vector<16xf32>
    %251 = vector.multi_reduction <add>, %250, %cst_111 [1] : vector<16x256xf32> to vector<16xf32>
    %252 = vector.shape_cast %251 : vector<16xf32> to vector<16x1xf32>
    %cst_112 = arith.constant 3.906250e-03 : f32
    %253 = vector.broadcast %cst_112 : f32 to vector<16x1xf32>
    %254 = arith.mulf %252, %253 : vector<16x1xf32>
    %255 = arith.mulf %249, %249 : vector<16x1xf32>
    %256 = arith.subf %254, %255 : vector<16x1xf32>
    %257 = vector.broadcast %249 : vector<16x1xf32> to vector<16x256xf32>
    %258 = arith.subf %245, %257 : vector<16x256xf32>
    %cst_113 = arith.constant 9.99999974E-6 : f32
    %259 = vector.broadcast %cst_113 : f32 to vector<16x1xf32>
    %260 = arith.addf %256, %259 : vector<16x1xf32>
    %261 = math.rsqrt %260 : vector<16x1xf32>
    %262 = vector.broadcast %261 : vector<16x1xf32> to vector<16x256xf32>
    %263 = arith.mulf %258, %262 : vector<16x256xf32>
    %264 = vector.broadcast %36 : vector<1x256xf32> to vector<16x256xf32>
    %265 = arith.mulf %263, %264 : vector<16x256xf32>
    %266 = vector.broadcast %37 : vector<1x256xf32> to vector<16x256xf32>
    %267 = arith.addf %265, %266 : vector<16x256xf32>
    %cst_114 = arith.constant 5.000000e-01 : f32
    %268 = vector.broadcast %cst_114 : f32 to vector<16x256xf32>
    %269 = arith.mulf %268, %267 : vector<16x256xf32>
    %cst_115 = arith.constant 4.471500e-02 : f32
    %270 = vector.broadcast %cst_115 : f32 to vector<16x256xf32>
    %271 = arith.mulf %270, %267 : vector<16x256xf32>
    %272 = arith.mulf %271, %267 : vector<16x256xf32>
    %273 = arith.mulf %272, %267 : vector<16x256xf32>
    %274 = arith.addf %267, %273 : vector<16x256xf32>
    %cst_116 = arith.constant 0.797884583 : f32
    %275 = vector.broadcast %cst_116 : f32 to vector<16x256xf32>
    %276 = arith.mulf %275, %274 : vector<16x256xf32>
    %277 = math.tanh %276 : vector<16x256xf32>
    %cst_117 = arith.constant 1.000000e+00 : f32
    %278 = vector.broadcast %cst_117 : f32 to vector<16x256xf32>
    %279 = arith.addf %278, %277 : vector<16x256xf32>
    %280 = arith.mulf %269, %279 : vector<16x256xf32>
    %c6_i32_118 = arith.constant 6 : i32
    %c640_i32_119 = arith.constant 640 : i32
    %c0_i32_120 = arith.constant 0 : i32
    %281 = tpu.memref_slice %arg3[%c640_i32_119, %c0_i32_120] : memref<896x256xbf16, #tpu.memory_space<any>> -> memref<256x256xbf16, #tpu.memory_space<any>>
    %c640_i32_121 = arith.constant 640 : i32
    %c0_i32_122 = arith.constant 0 : i32
    %282 = tpu.memref_slice %arg6[%c640_i32_121, %c0_i32_122] : memref<896x256xbf16, #tpu.memory_space<vmem>> -> memref<256x256xbf16, #tpu.memory_space<vmem>>
    %283 = tpu.memref_slice %arg7[%c6_i32_118] : memref<7x!tpu.dma_semaphore, #tpu.memory_space<semaphore_mem>> -> memref<1x!tpu.dma_semaphore, #tpu.memory_space<semaphore_mem>>
    %284 = tpu.memref_squeeze %283 : memref<1x!tpu.dma_semaphore, #tpu.memory_space<semaphore_mem>> -> memref<!tpu.dma_semaphore, #tpu.memory_space<semaphore_mem>>
    tpu.wait_dma2 semaphore(%284 : memref<!tpu.dma_semaphore, #tpu.memory_space<semaphore_mem>>) src(%281 : memref<256x256xbf16, #tpu.memory_space<any>>) dst(%282 : memref<256x256xbf16, #tpu.memory_space<vmem>>)
    %c640 = arith.constant 640 : index
    %c0_123 = arith.constant 0 : index
    %285 = vector.load %arg6[%c640, %c0_123] : memref<896x256xbf16, #tpu.memory_space<vmem>>, vector<256x256xbf16>
    %286 = arith.truncf %280 : vector<16x256xf32> to vector<16x256xbf16>
    %cst_124 = arith.constant dense<0.000000e+00> : vector<16x256xf32>
    %287 = tpu.matmul %286, %285, %cst_124 {dimension_numbers = #tpu.dot_dimension_numbers<[1], [0], [0], [1], [0, 0, 1, 1], [], []>} : vector<16x256xbf16>, vector<256x256xbf16>, vector<16x256xf32> -> vector<16x256xf32>
    %288 = vector.broadcast %38 : vector<1x256xf32> to vector<16x256xf32>
    %289 = arith.addf %287, %288 : vector<16x256xf32>
    %c0_125 = arith.constant 0 : index
    %c0_126 = arith.constant 0 : index
    %290 = vector.load %arg4[%c0_125, %c0_126] : memref<16x256xf32, #tpu.memory_space<vmem>>, vector<16x256xf32>
    tpu.vector_store %arg4[%c0_125, %c0_126], %289 {strides = array<i32>} : memref<16x256xf32, #tpu.memory_space<vmem>>, vector<16x256xf32>,
    return
  }
}

</mosaic_0001>

<bundles_post_ra>
// kernel: tpu_custom_call.1
= control target key start
LH: loop header
LB: loop body
LE: loop exit
PB: predicated region body
PF: predicated region fallthrough
CT: control target
= control target key end

     0   :  { %9 = vsyncpa [#allocation6], 0  ;;  %s2935_s0 = inlined_call_operand.hbm [shape: f32[16,128], index: 0, kind: input, shape index: {}]   ;;  %s2936_s1 = inlined_call_operand.hbm [shape: f32[15,256], index: 1, kind: input, shape index: {}]   ;;  %s2937_s2 = inlined_call_operand.hbm [shape: bf16[512,128], index: 2, kind: input, shape index: {}]   ;;  %s2938_s3 = inlined_call_operand.hbm [shape: bf16[896,256], index: 3, kind: input, shape index: {}]   ;;  %s2939_s4 = inlined_call_operand.hbm [shape: f32[16,256], index: 4, kind: output, shape index: {}]  }
   0x1   :  { %10 = vsyncpa [#allocation9], 0 }
   0x2   :  { %11 = vsyncpa [#allocation7], 0  ;;  %s2698_s15 = smov [#allocation5]  }
   0x3   :  { %s17_s16 = sshll.u32 %s2698_s15, 4  ;;  %s18_s16 = int_to_ptr.vmem [resolvable:$true] %s17_s16 }
   0x4   :  { %s2471_s17 = scalar_lea.vmem %s18_s16, 256  ;;  %p2476_p1 = scmp.lt.s32.totalorder %s18_s16, %s18_s16 }
   0x5   :  { %p2472_p0 = scmp.ne.s32.totalorder %s18_s16, %s2471_s17  ;;  %p2477_p2 = scmp.lt.s32.totalorder %s2471_s17, %s2471_s17 }
   0x7   :  { %p2478_p3 = por %p2477_p2, %p2476_p1 }
   0x9   :  { %p2479_p4 = pnand %p2478_p3, %p2472_p0 }
   0xb   :  { %2482 = shalt.err (!%p2479_p4)
}
   0xc   :  { %s2699_s18 = smov 128   ;;  %s2700_s19 = smov 8  }
   0xd   :  { %23 = dma.hbm_to_vmem [thread:$0]  %s2935_s0, 256, %s18_s16, [#allocation6], %s2699_s18, %s2699_s18, %s2700_s19  }
   0xe   :  { %s2701_s22 = smov [#allocation8]  }
   0xf   :  { %s29_s23 = sshll.u32 %s2701_s22, 4  ;;  %s30_s23 = int_to_ptr.vmem [resolvable:$true] %s29_s23 }
  0x10   :  { %s2491_s24 = scalar_lea.vmem %s30_s23, 512  ;;  %p2496_p6 = scmp.lt.s32.totalorder %s30_s23, %s30_s23 }
  0x11   :  { %p2492_p5 = scmp.ne.s32.totalorder %s30_s23, %s2491_s24  ;;  %p2497_p7 = scmp.lt.s32.totalorder %s2491_s24, %s2491_s24 }
  0x13   :  { %p2498_p8 = por %p2497_p7, %p2496_p6 }
  0x15   :  { %p2499_p9 = pnand %p2498_p8, %p2492_p5 }
  0x17   :  { %2502 = shalt.err (!%p2499_p9)
}
  0x18   :  { %s2702_s25 = smov 256   ;;  %s2703_s26 = smov 16  }
  0x19   :  { %35 = dma.hbm_to_vmem [thread:$0]  %s2936_s1, 512, %s30_s23, [#allocation9], %s2702_s25, %s2702_s25, %s2703_s26  }
  0x1a   :  { %2678 = dma.done.wait [#allocation6], 256  }
  0x1b   :  { %2679 = vsyncadd [#allocation6], 4294967040 }
  0x1c   :  { %2680 = dma.done.wait [#allocation9], 512  }
  0x1d   :  { %2681 = vsyncadd [#allocation9], 4294966784  ;;  %s2704_s0 = smov [#allocation3]   ;;  %s2705_s30 = smov [#allocation2]  }
  0x1e   :  { %s50_s29 = sshll.u32 %s2704_s0, 4  ;;  %s62_s5 = sshll.u32 %s2705_s30, 4  ;;  %s2749_s29 = int_to_ptr.vmem [resolvable:$true] %s50_s29  ;;  %s2751_s5 = int_to_ptr.vmem [resolvable:$true] %s62_s5 }
  0x1f   :  { %s2511_s6 = scalar_lea.vmem %s2749_s29, 2048  ;;  %s2756_s7 = scalar_lea.vmem %s2749_s29, 14336 }
  0x20   :  { %p2512_p10 = scmp.ne.s32.totalorder %s2749_s29, %s2511_s6  ;;  %p2516_p11 = scmp.lt.s32.totalorder %s2749_s29, %s2749_s29 }
  0x21   :  { %p2517_p12 = scmp.lt.s32.totalorder %s2756_s7, %s2511_s6 }
  0x23   :  { %p2518_p13 = por %p2517_p12, %p2516_p11 }
  0x25   :  { %p2519_p0 = pnand %p2518_p13, %p2512_p10 }
  0x27   :  { %2522 = shalt.err (!%p2519_p0)  }
  0x28   :  { %53 = dma.hbm_to_vmem [thread:$0]  %s2938_s3, 2048, %s2749_s29, [#allocation4] }
  0x29   :  { %s2531_s9 = scalar_lea.vmem %s2751_s5, 2048  ;;  %s2768_s10 = scalar_lea.vmem %s2751_s5, 4096 }
  0x2a   :  { %p2532_p1 = scmp.ne.s32.totalorder %s2751_s5, %s2531_s9  ;;  %p2536_p2 = scmp.lt.s32.totalorder %s2751_s5, %s2751_s5 }
  0x2b   :  { %p2537_p3 = scmp.lt.s32.totalorder %s2768_s10, %s2531_s9 }
  0x2d   :  { %p2538_p4 = por %p2537_p3, %p2536_p2 }
  0x2f   :  { %p2539_p5 = pnand %p2538_p4, %p2532_p1 }
  0x31   :  { %2542 = shalt.err (!%p2539_p5)  }
  0x32   :  { %65 = dma.hbm_to_vmem [thread:$0]  %s2937_s2, 2048, %s2751_s5, [#allocation4 + $0x1]  ;;  %v2783_v0 = vld [vmem:[#allocation8] sm:$0xff]  ;;  %v2785_v1 = vld [vmem:[#allocation8 + $0x8] sm:$0xff]  ;;  %v2787_v2 = vld [vmem:[#allocation8 + $0x10] sm:$0x7f] }
  0x33   :  { %s66_s15 = scalar_lea.hbm %s2937_s2, 2048  ;;  %s2706_s16 = smov [#allocation2 + $0x80]   ;;  %v2789_v3 = vld [vmem:[#allocation8 + $0x18] sm:$0x7f]  ;;  %v2791_v4 = vld [vmem:[#allocation5] sm:$0xff] }
  0x34   :  { %s76_s17 = sshll.u32 %s2706_s16, 4  ;;  %s80_s20 = scalar_lea.hbm %s2937_s2, 3072  ;;  %v2793_v5 = vld [vmem:[#allocation5 + $0x8] sm:$0xff]  ;;  %s77_s17 = int_to_ptr.vmem [resolvable:$true] %s76_s17 }
  0x35   :  { %s2553_s21 = scalar_lea.vmem %s77_s17, 1024  ;;  %p2558_p7 = scmp.lt.s32.totalorder %s77_s17, %s2751_s5 }
  0x36   :  { %p2554_p6 = scmp.ne.s32.totalorder %s77_s17, %s2553_s21  ;;  %p2559_p8 = scmp.lt.s32.totalorder %s2768_s10, %s2553_s21 }
  0x38   :  { %p2560_p9 = por %p2559_p8, %p2558_p7 }
  0x3a   :  { %p2561_p10 = pnand %p2560_p9, %p2554_p6 }
  0x3c   :  { %2564 = shalt.err (!%p2561_p10)  }
  0x3d   :  { %79 = dma.hbm_to_vmem [thread:$0]  %s66_s15, 1024, %s77_s17, [#allocation4 + $0x2] }
  0x3e   :  { %s2707_s2 = smov [#allocation2 + $0xc0]   ;;  %s94_s27 = scalar_lea.hbm %s2938_s3, 2048 }
  0x3f   :  { %s90_s22 = sshll.u32 %s2707_s2, 4  ;;  %s91_s22 = int_to_ptr.vmem [resolvable:$true] %s90_s22 }
  0x40   :  { %s2576_s28 = scalar_lea.vmem %s91_s22, 1024  ;;  %p2581_p12 = scmp.lt.s32.totalorder %s91_s22, %s2751_s5 }
  0x41   :  { %p2577_p11 = scmp.ne.s32.totalorder %s91_s22, %s2576_s28  ;;  %p2582_p13 = scmp.lt.s32.totalorder %s2768_s10, %s2576_s28 }
  0x43   :  { %p2583_p0 = por %p2582_p13, %p2581_p12 }
  0x45   :  { %p2584_p1 = pnand %p2583_p0, %p2577_p11 }
  0x47   :  { %2587 = shalt.err (!%p2584_p1)  }
  0x48   :  { %93 = dma.hbm_to_vmem [thread:$0]  %s80_s20, 1024, %s91_s22, [#allocation4 + $0x3] }
  0x49   :  { %s2708_s0 = smov [#allocation3 + $0x80]   ;;  %s108_s8 = scalar_lea.hbm %s2938_s3, 4096 }
  0x4a   :  { %s104_s30 = sshll.u32 %s2708_s0, 4  ;;  %s105_s30 = int_to_ptr.vmem [resolvable:$true] %s104_s30 }
  0x4b   :  { %s2599_s9 = scalar_lea.vmem %s105_s30, 2048  ;;  %p2604_p3 = scmp.lt.s32.totalorder %s105_s30, %s2749_s29 }
  0x4c   :  { %p2600_p2 = scmp.ne.s32.totalorder %s105_s30, %s2599_s9  ;;  %p2605_p4 = scmp.lt.s32.totalorder %s2756_s7, %s2599_s9 }
  0x4e   :  { %p2606_p5 = por %p2605_p4, %p2604_p3 }
  0x50   :  { %p2607_p6 = pnand %p2606_p5, %p2600_p2 }
  0x52   :  { %2610 = shalt.err (!%p2607_p6)  }
  0x53   :  { %107 = dma.hbm_to_vmem [thread:$0]  %s94_s27, 2048, %s105_s30, [#allocation4 + $0x4] }
  0x54   :  { %s2709_s5 = smov [#allocation3 + $0x100]   ;;  %s122_s13 = scalar_lea.hbm %s2938_s3, 10240 }
  0x55   :  { %s118_s10 = sshll.u32 %s2709_s5, 4  ;;  %s119_s10 = int_to_ptr.vmem [resolvable:$true] %s118_s10 }
  0x56   :  { %s2622_s14 = scalar_lea.vmem %s119_s10, 6144  ;;  %p2627_p8 = scmp.lt.s32.totalorder %s119_s10, %s2749_s29 }
  0x57   :  { %p2623_p7 = scmp.ne.s32.totalorder %s119_s10, %s2622_s14  ;;  %p2628_p9 = scmp.lt.s32.totalorder %s2756_s7, %s2622_s14 }
  0x59   :  { %p2629_p10 = por %p2628_p9, %p2627_p8 }
  0x5b   :  { %p2630_p11 = pnand %p2629_p10, %p2623_p7 }
  0x5d   :  { %2633 = shalt.err (!%p2630_p11)  }
  0x5e   :  { %121 = dma.hbm_to_vmem [thread:$0]  %s108_s8, 6144, %s119_s10, [#allocation4 + $0x5] }
  0x5f   :  { %s2710_s15 = smov [#allocation3 + $0x280]  }
  0x60   :  { %s132_s16 = sshll.u32 %s2710_s15, 4  ;;  %s133_s16 = int_to_ptr.vmem [resolvable:$true] %s132_s16 }
  0x61   :  { %s2645_s17 = scalar_lea.vmem %s133_s16, 4096  ;;  %p2650_p13 = scmp.lt.s32.totalorder %s133_s16, %s2749_s29 }
  0x62   :  { %p2646_p12 = scmp.ne.s32.totalorder %s133_s16, %s2645_s17  ;;  %p2651_p0 = scmp.lt.s32.totalorder %s2756_s7, %s2645_s17 }
  0x64   :  { %p2652_p1 = por %p2651_p0, %p2650_p13 }
  0x66   :  { %p2653_p2 = pnand %p2652_p1, %p2646_p12 }
  0x68   :  { %2656 = shalt.err (!%p2653_p2)  }
  0x69   :  { %135 = dma.hbm_to_vmem [thread:$0]  %s122_s13, 4096, %s133_s16, [#allocation4 + $0x6] }
  0x6a   :  { %2682 = dma.done.wait [#allocation4], 2048 }
  0x6b   :  { %2683 = vsyncadd [#allocation4], 4294965248  ;;  %v2711_v6 = vmov 0   ;;  %v2211_v7 = vld [vmem:[#allocation3 + $0x74] ss:$8 sps:$4 sm:$0xff]   ;;  %v162_v23 = vpack.c.bf16 %v2793_v5, %v2791_v4  ;;  %v163_v24 = vlaneseq }
  0x6c   :  { %283 = vmatprep.mubr.bf16.mxu1 %v2711_v6  ;;  %v2213_v8 = vld [vmem:[#allocation3 + $0x70] ss:$8 sps:$4 sm:$0xff]   ;;  %251 = vmatprep.subr.bf16.mxu1 %v2211_v7  ;;  %v2214_v9 = vld [vmem:[#allocation3 + $0x64] ss:$8 sps:$4 sm:$0xff]   ;;  %v2216_v10 = vld [vmem:[#allocation3 + $0x60] ss:$8 sps:$4 sm:$0xff]  }
  0x6d   :  { %252 = vmatpush1.bf16.msra.mxu1 %v2213_v8  ;;  %v2217_v11 = vld [vmem:[#allocation3 + $0x54] ss:$8 sps:$4 sm:$0xff]   ;;  %v2219_v12 = vld [vmem:[#allocation3 + $0x50] ss:$8 sps:$4 sm:$0xff]   ;;  %v2220_v13 = vld [vmem:[#allocation3 + $0x44] ss:$8 sps:$4 sm:$0xff]  }
  0x6e   :  { %253 = vmatprep.subr.bf16.mxu1 %v2214_v9  ;;  %v2222_v14 = vld [vmem:[#allocation3 + $0x40] ss:$8 sps:$4 sm:$0xff]   ;;  %v2223_v15 = vld [vmem:[#allocation3 + $0x34] ss:$8 sps:$4 sm:$0xff]   ;;  %v2225_v16 = vld [vmem:[#allocation3 + $0x30] ss:$8 sps:$4 sm:$0xff]  }
  0x6f   :  { %v2226_v17 = vld [vmem:[#allocation3 + $0x24] ss:$8 sps:$4 sm:$0xff]   ;;  %v2228_v18 = vld [vmem:[#allocation3 + $0x20] ss:$8 sps:$4 sm:$0xff]   ;;  %v2229_v19 = vld [vmem:[#allocation3 + $0x14] ss:$8 sps:$4 sm:$0xff]  }
  0x70   :  { %v2231_v20 = vld [vmem:[#allocation3 + $0x10] ss:$8 sps:$4 sm:$0xff]   ;;  %v2232_v21 = vld [vmem:[#allocation3 + $0x4] ss:$8 sps:$4 sm:$0xff]   ;;  %v2234_v22 = vld [vmem:[#allocation3] ss:$8 sps:$4 sm:$0xff]  }
  0x71   :  { %254 = vmatpush1.bf16.msra.mxu1 %v2216_v10  ;;  %v2817_v25 = vshrl.u32 %v163_v24, 7 }
  0x72   :  { %255 = vmatprep.subr.bf16.mxu1 %v2217_v11 }
  0x73   :  { %v2820_v26 = vsub.s32 0, %v2817_v25  ;;  %v2827_v59 = vsub.s32 1, %v2817_v25  ;;  %v2830_v60 = vsub.s32 2, %v2817_v25 }
  0x75   :  { %256 = vmatpush1.bf16.msra.mxu1 %v2219_v12  ;;  %v166_v27 = vrot.slane %v2783_v0, %v2820_v26  ;;  %v170_v28 = vrot.slane %v2785_v1, %v2820_v26  ;;  %v333_v61 = vrot.slane %v2783_v0, %v2827_v59  ;;  %v337_v62 = vrot.slane %v2785_v1, %v2827_v59 }
  0x76   :  { %257 = vmatprep.subr.bf16.mxu1 %v2220_v13  ;;  %v345_v7 = vrot.slane %v2783_v0, %v2830_v60  ;;  %v349_v8 = vrot.slane %v2785_v1, %v2830_v60 }
  0x79   :  { %258 = vmatpush1.bf16.msra.mxu1 %v2222_v14 }
  0x7a   :  { %259 = vmatprep.subr.bf16.mxu1 %v2223_v15 }
  0x7d   :  { %260 = vmatpush1.bf16.msra.mxu1 %v2225_v16 }
  0x7e   :  { %261 = vmatprep.subr.bf16.mxu1 %v2226_v17 }
  0x81   :  { %262 = vmatpush1.bf16.msra.mxu1 %v2228_v18 }
  0x82   :  { %263 = vmatprep.subr.bf16.mxu1 %v2229_v19 }
  0x85   :  { %264 = vmatpush1.bf16.msra.mxu1 %v2231_v20 }
  0x86   :  { %265 = vmatprep.subr.bf16.mxu1 %v2232_v21 }
  0x89   :  { %266 = vmatpush1.bf16.msra.mxu1 %v2234_v22 }
  0x8c   :  { %284 = vmatmul.mubr.bf16.vlgmr.msra.gmra.mxu1 %v162_v23 }
 0x14c   :  { %v285_v29 = vpop.f32.mrf.mxu1 }
 0x14d   :  { %v286_v30 = vadd.f32 %v285_v29, %v166_v27 }
 0x14e   :  { %v287_v31 = vpop.f32.mrf.mxu1 }
 0x14f   :  { %v288_v32 = vadd.f32 %v287_v31, %v170_v28  ;;  %v302_v36 = vmul.f32 %v286_v30, %v286_v30 }
 0x150   :  { %v289_v33 = vpop.f32.mrf.mxu1 }
 0x151   :  { %v290_v34 = vadd.f32 %v289_v33, %v166_v27  ;;  %v294_v35 = vadd.f32 %v288_v32, %v286_v30  ;;  %v303_v37 = vmul.f32 %v288_v32, %v288_v32 }
 0x152   :  { %v291_v38 = vpop.f32.mrf.mxu1 }
 0x153   :  { %v292_v39 = vadd.f32 %v291_v38, %v170_v28  ;;  %295 = vadd.xlane.f32.xlu0 %v294_v35  ;;  %v306_v40 = vadd.f32 %v303_v37, %v302_v36  ;;  %v304_v42 = vmul.f32 %v290_v34, %v290_v34 }
 0x155   :  { %307 = vadd.xlane.f32.xlu1 %v306_v40  ;;  %v297_v41 = vadd.f32 %v292_v39, %v290_v34  ;;  %v305_v43 = vmul.f32 %v292_v39, %v292_v39 }
 0x157   :  { %298 = vadd.xlane.f32.xlu0 %v297_v41  ;;  %v309_v44 = vadd.f32 %v305_v43, %v304_v42 }
 0x159   :  { %310 = vadd.xlane.f32.xlu1 %v309_v44 }
 0x1dc   :  { %v296_v45 = vpop.xlane.xlu0 %295 }
 0x1dd   :  { %v300_v46 = vmul.f32 0.00390625, %v296_v45 }
 0x1de   :  { %v308_v47 = vpop.xlane.xlu1 %307 }
 0x1df   :  { %v312_v48 = vmul.f32 0.00390625, %v308_v47  ;;  %v314_v49 = vmul.f32 %v300_v46, %v300_v46  ;;  %v318_v63 = vsub.f32 %v286_v30, %v300_v46  ;;  %v319_v4 = vsub.f32 %v288_v32, %v300_v46 }
 0x1e0   :  { %v299_v50 = vpop.xlane.xlu0 %298 }
 0x1e1   :  { %v316_v51 = vsub.f32 %v312_v48, %v314_v49  ;;  %v301_v52 = vmul.f32 0.00390625, %v299_v50 }
 0x1e2   :  { %v311_v53 = vpop.xlane.xlu1 %310 }
 0x1e3   :  { %v322_v54 = vadd.f32 1e-05, %v316_v51  ;;  %v313_v55 = vmul.f32 0.00390625, %v311_v53  ;;  %v315_v56 = vmul.f32 %v301_v52, %v301_v52  ;;  %v320_v13 = vsub.f32 %v290_v34, %v301_v52 }
 0x1e4   :  { %v321_v14 = vsub.f32 %v292_v39, %v301_v52 }
 0x1e5   :  { %2235 = vrsqrt.f32 %v322_v54  ;;  %v317_v57 = vsub.f32 %v313_v55, %v315_v56 }
 0x1e7   :  { %v323_v58 = vadd.f32 1e-05, %v317_v57 }
 0x1e9   :  { %2237 = vrsqrt.f32 %v323_v58 }
 0x1f2   :  { %v2236_v5 = vpop.eup %2235 }
 0x1f3   :  { %v326_v9 = vmul.f32 %v2236_v5, %v318_v63  ;;  %v327_v10 = vmul.f32 %v2236_v5, %v319_v4 }
 0x1f5   :  { %v338_v11 = vmul.f32 %v333_v61, %v326_v9  ;;  %v339_v12 = vmul.f32 %v337_v62, %v327_v10 }
 0x1f6   :  { %v2238_v15 = vpop.eup %2237 }
 0x1f7   :  { %v350_v16 = vadd.f32 %v345_v7, %v338_v11  ;;  %v351_v17 = vadd.f32 %v349_v8, %v339_v12  ;;  %v328_v18 = vmul.f32 %v2238_v15, %v320_v13  ;;  %v329_v19 = vmul.f32 %v2238_v15, %v321_v14 }
 0x1f9   :  { %v358_v20 = vmul.f32 0.044715, %v350_v16  ;;  %v359_v21 = vmul.f32 0.044715, %v351_v17  ;;  %v340_v22 = vmul.f32 %v333_v61, %v328_v18  ;;  %v341_v23 = vmul.f32 %v337_v62, %v329_v19 }
 0x1fa   :  { %v354_v48 = vmul.f32 0.5, %v350_v16  ;;  %v355_v50 = vmul.f32 0.5, %v351_v17 }
 0x1fb   :  { %v362_v24 = vmul.f32 %v358_v20, %v350_v16  ;;  %v363_v27 = vmul.f32 %v359_v21, %v351_v17  ;;  %v352_v28 = vadd.f32 %v345_v7, %v340_v22  ;;  %v353_v29 = vadd.f32 %v349_v8, %v341_v23 }
 0x1fd   :  { %v366_v30 = vmul.f32 %v362_v24, %v350_v16  ;;  %v367_v31 = vmul.f32 %v363_v27, %v351_v17  ;;  %v360_v32 = vmul.f32 0.044715, %v352_v28  ;;  %v361_v33 = vmul.f32 0.044715, %v353_v29 }
 0x1fe   :  { %v356_v56 = vmul.f32 0.5, %v352_v28  ;;  %v357_v58 = vmul.f32 0.5, %v353_v29 }
 0x1ff   :  { %v370_v35 = vadd.f32 %v366_v30, %v350_v16  ;;  %v371_v34 = vadd.f32 %v367_v31, %v351_v17  ;;  %v364_v36 = vmul.f32 %v360_v32, %v352_v28  ;;  %v365_v37 = vmul.f32 %v361_v33, %v353_v29 }
 0x201   :  { %v374_v38 = vmul.f32 0.7978846, %v370_v35  ;;  %v375_v39 = vmul.f32 0.7978846, %v371_v34  ;;  %v368_v40 = vmul.f32 %v364_v36, %v352_v28  ;;  %v369_v41 = vmul.f32 %v365_v37, %v353_v29 }
 0x203   :  { %2239 = vtanh.f32 %v374_v38  ;;  %v372_v42 = vadd.f32 %v368_v40, %v352_v28  ;;  %v373_v43 = vadd.f32 %v369_v41, %v353_v29 }
 0x204   :  { %2241 = vtanh.f32 %v375_v39 }
 0x205   :  { %v376_v44 = vmul.f32 0.7978846, %v372_v42  ;;  %v377_v45 = vmul.f32 0.7978846, %v373_v43 }
 0x207   :  { %2243 = vtanh.f32 %v376_v44 }
 0x208   :  { %2245 = vtanh.f32 %v377_v45 }
 0x210   :  { %v2240_v46 = vpop.eup %2239 }
 0x211   :  { %v2242_v47 = vpop.eup %2241  ;;  %v382_v49 = vadd.f32 1.0, %v2240_v46 }
 0x212   :  { %v383_v51 = vadd.f32 1.0, %v2242_v47 }
 0x213   :  { %v386_v52 = vmul.f32 %v382_v49, %v354_v48 }
 0x214   :  { %v387_v53 = vmul.f32 %v383_v51, %v355_v50  ;;  %v2244_v54 = vpop.eup %2243 }
 0x215   :  { %v2246_v55 = vpop.eup %2245  ;;  %v384_v57 = vadd.f32 1.0, %v2244_v54 }
 0x216   :  { %v385_v61 = vadd.f32 1.0, %v2246_v55 }
 0x217   :  { %v388_v62 = vmul.f32 %v384_v57, %v356_v56 }
 0x218   :  { %v389_v63 = vmul.f32 %v385_v61, %v357_v58 }
 0x219   :  { %2684 = dma.done.wait [#allocation4 + $0x1], 2048 }
 0x21a   :  { %2685 = vsyncadd [#allocation4 + $0x1], 4294965248  ;;  %v427_v4 = vpack.c.bf16 %v389_v63, %v387_v53  ;;  %v2247_v5 = vld [vmem:[#allocation2 + $0x78] sm:$0xff]   ;;  %v2249_v8 = vld [vmem:[#allocation2 + $0x70] sm:$0xff]   ;;  %v426_v22 = vpack.c.bf16 %v388_v62, %v386_v52  ;;  %v431_v24 = vrot.slane %v2787_v2, %v2830_v60  ;;  %v2843_v49 = vsub.s32 3, %v2817_v25 }
 0x21b   :  { %v2248_v7 = vld [vmem:[#allocation2 + $0x38] sm:$0xff]   ;;  %2114 = vmatprep.subr.bf16.mxu1 %v2247_v5  ;;  %v2250_v9 = vld [vmem:[#allocation2 + $0x30] sm:$0xff]   ;;  %v2251_v10 = vld [vmem:[#allocation2 + $0x68] sm:$0xff]   ;;  %v2846_v50 = vsub.s32 4, %v2817_v25 }
 0x21c   :  { %560 = vmatprep.mubr.bf16.mxu1 %v427_v4  ;;  %2115 = vmatpush3.bf16.msra.mxu1 %v2248_v7  ;;  %v2252_v11 = vld [vmem:[#allocation2 + $0x28] sm:$0xff]   ;;  %v2253_v12 = vld [vmem:[#allocation2 + $0x60] sm:$0xff]   ;;  %v2255_v14 = vld [vmem:[#allocation2 + $0x58] sm:$0xff]   ;;  %v598_v52 = vrot.slane %v2787_v2, %v2843_v49 }
 0x21d   :  { %2116 = vmatprep.subr.bf16.mxu1 %v2249_v8  ;;  %v2254_v13 = vld [vmem:[#allocation2 + $0x20] sm:$0xff]   ;;  %v2256_v15 = vld [vmem:[#allocation2 + $0x18] sm:$0xff]   ;;  %v2257_v16 = vld [vmem:[#allocation2 + $0x50] sm:$0xff]   ;;  %v604_v54 = vrot.slane %v2787_v2, %v2846_v50 }
 0x21e   :  { %v2258_v17 = vld [vmem:[#allocation2 + $0x10] sm:$0xff]   ;;  %v2259_v18 = vld [vmem:[#allocation2 + $0x48] sm:$0xff]   ;;  %v2261_v20 = vld [vmem:[#allocation2 + $0x40] sm:$0xff]  }
 0x21f   :  { %v2260_v19 = vld [vmem:[#allocation2 + $0x8] sm:$0xff]   ;;  %v2262_v21 = vld [vmem:[#allocation2] sm:$0xff]  }
 0x220   :  { %2117 = vmatpush3.bf16.msra.mxu1 %v2250_v9 }
 0x221   :  { %2118 = vmatprep.subr.bf16.mxu1 %v2251_v10 }
 0x224   :  { %2119 = vmatpush3.bf16.msra.mxu1 %v2252_v11 }
 0x225   :  { %2120 = vmatprep.subr.bf16.mxu1 %v2253_v12 }
 0x228   :  { %2121 = vmatpush3.bf16.msra.mxu1 %v2254_v13 }
 0x229   :  { %2122 = vmatprep.subr.bf16.mxu1 %v2255_v14 }
 0x22c   :  { %2123 = vmatpush3.bf16.msra.mxu1 %v2256_v15 }
 0x22d   :  { %2124 = vmatprep.subr.bf16.mxu1 %v2257_v16 }
 0x230   :  { %2125 = vmatpush3.bf16.msra.mxu1 %v2258_v17 }
 0x231   :  { %2126 = vmatprep.subr.bf16.mxu1 %v2259_v18 }
 0x234   :  { %2127 = vmatpush3.bf16.msra.mxu1 %v2260_v19 }
 0x235   :  { %2128 = vmatprep.subr.bf16.mxu1 %v2261_v20 }
 0x238   :  { %2129 = vmatpush3.bf16.msra.mxu1 %v2262_v21 }
 0x23b   :  { %561 = vmatmul.mubr.bf16.vlgmr.msra.gmra.mxu1 %v426_v22 }
 0x2fb   :  { %v2130_v23 = vpop.f32.mrf.mxu1 }
 0x2fd   :  { %v2131_v27 = vpop.f32.mrf.mxu1 }
 0x2fe   :  { %v2132_v28 = vadd.f32 %v2131_v27, %v2130_v23 }
 0x2ff   :  { %v2133_v29 = vpop.f32.mrf.mxu1 }
 0x300   :  { %v563_v30 = vadd.f32 %v2132_v28, %v431_v24 }
 0x301   :  { %v2134_v31 = vpop.f32.mrf.mxu1 }
 0x302   :  { %v2135_v32 = vadd.f32 %v2134_v31, %v2133_v29  ;;  %569 = vadd.xlane.f32.xlu0 %v563_v30  ;;  %v575_v33 = vmul.f32 %v563_v30, %v563_v30 }
 0x304   :  { %v566_v35 = vadd.f32 %v2135_v32, %v431_v24  ;;  %577 = vadd.xlane.f32.xlu1 %v575_v33 }
 0x306   :  { %571 = vadd.xlane.f32.xlu0 %v566_v35  ;;  %v576_v34 = vmul.f32 %v566_v35, %v566_v35 }
 0x308   :  { %579 = vadd.xlane.f32.xlu1 %v576_v34 }
 0x38b   :  { %v570_v36 = vpop.xlane.xlu0 %569 }
 0x38c   :  { %v573_v37 = vmul.f32 0.0078125, %v570_v36 }
 0x38d   :  { %v578_v38 = vpop.xlane.xlu1 %577 }
 0x38e   :  { %v583_v39 = vmul.f32 %v573_v37, %v573_v37  ;;  %v581_v40 = vmul.f32 0.0078125, %v578_v38  ;;  %v587_v51 = vsub.f32 %v563_v30, %v573_v37 }
 0x38f   :  { %v572_v41 = vpop.xlane.xlu0 %571 }
 0x390   :  { %v585_v60 = vsub.f32 %v581_v40, %v583_v39  ;;  %v574_v42 = vmul.f32 0.0078125, %v572_v41 }
 0x391   :  { %v580_v43 = vpop.xlane.xlu1 %579 }
 0x392   :  { %v589_v44 = vadd.f32 1e-05, %v585_v60  ;;  %v584_v45 = vmul.f32 %v574_v42, %v574_v42  ;;  %v582_v46 = vmul.f32 0.0078125, %v580_v43  ;;  %v588_v57 = vsub.f32 %v566_v35, %v574_v42 }
 0x394   :  { %2263 = vrsqrt.f32 %v589_v44  ;;  %v586_v47 = vsub.f32 %v582_v46, %v584_v45 }
 0x396   :  { %v590_v48 = vadd.f32 1e-05, %v586_v47 }
 0x398   :  { %2265 = vrsqrt.f32 %v590_v48 }
 0x3a1   :  { %v2264_v53 = vpop.eup %2263 }
 0x3a2   :  { %v593_v55 = vmul.f32 %v2264_v53, %v587_v51 }
 0x3a4   :  { %v599_v56 = vmul.f32 %v598_v52, %v593_v55 }
 0x3a5   :  { %v2266_v58 = vpop.eup %2265 }
 0x3a6   :  { %v605_v61 = vadd.f32 %v604_v54, %v599_v56  ;;  %v594_v62 = vmul.f32 %v2266_v58, %v588_v57 }
 0x3a8   :  { %v600_v63 = vmul.f32 %v598_v52, %v594_v62 }
 0x3aa   :  { %v606_v4 = vadd.f32 %v604_v54, %v600_v63 }
 0x3ab   :  { %2686 = dma.done.wait [#allocation4 + $0x2], 1024 }
 0x3ac   :  { %2687 = vsyncadd [#allocation4 + $0x2], 4294966272  ;;  %v2712_v5 = vmov 0.0   ;;  %vm2713_vm0 = vmmov 0   ;;  %v2267_v7 = vld [vmem:[#allocation2 + $0xb8] sm:$0xff]   ;;  %v2268_v8 = vld [vmem:[#allocation2 + $0xb0] sm:$0xff]   ;;  %v626_v15 = vpack.c.bf16 %v606_v4, %v605_v61 }
 0x3ad   :  { %2154 = vmatprep.subr.bf16.mxu0 %v2712_v5  ;;  %2170 = vmatprep.mubr.msk.bf16.mxu0 %vm2713_vm0, %v2712_v5  ;;  %v2269_v9 = vld [vmem:[#allocation2 + $0xa8] sm:$0xff]   ;;  %v2270_v10 = vld [vmem:[#allocation2 + $0xa0] sm:$0xff]   ;;  %v2271_v11 = vld [vmem:[#allocation2 + $0x98] sm:$0xff]   ;;  %v2854_v16 = vsub.s32 5, %v2817_v25 }
 0x3ae   :  { %2155 = vmatpush3.bf16.msra.mxu0 %v2267_v7  ;;  %v2272_v12 = vld [vmem:[#allocation2 + $0x90] sm:$0xff]   ;;  %v2273_v13 = vld [vmem:[#allocation2 + $0x88] sm:$0xff]   ;;  %v2274_v14 = vld [vmem:[#allocation2 + $0x80] sm:$0xff]  }
 0x3af   :  { %2156 = vmatprep.subr.bf16.mxu0 %v2712_v5  ;;  %v630_v17 = vrot.slane %v2787_v2, %v2854_v16 }
 0x3b2   :  { %2157 = vmatpush3.bf16.msra.mxu0 %v2268_v8 }
 0x3b3   :  { %2158 = vmatprep.subr.bf16.mxu0 %v2712_v5 }
 0x3b6   :  { %2159 = vmatpush3.bf16.msra.mxu0 %v2269_v9 }
 0x3b7   :  { %2160 = vmatprep.subr.bf16.mxu0 %v2712_v5 }
 0x3ba   :  { %2161 = vmatpush3.bf16.msra.mxu0 %v2270_v10 }
 0x3bb   :  { %2162 = vmatprep.subr.bf16.mxu0 %v2712_v5 }
 0x3be   :  { %2163 = vmatpush3.bf16.msra.mxu0 %v2271_v11 }
 0x3bf   :  { %2164 = vmatprep.subr.bf16.mxu0 %v2712_v5 }
 0x3c2   :  { %2165 = vmatpush3.bf16.msra.mxu0 %v2272_v12 }
 0x3c3   :  { %2166 = vmatprep.subr.bf16.mxu0 %v2712_v5 }
 0x3c6   :  { %2167 = vmatpush3.bf16.msra.mxu0 %v2273_v13 }
 0x3c7   :  { %2168 = vmatprep.subr.bf16.mxu0 %v2712_v5 }
 0x3ca   :  { %2169 = vmatpush3.bf16.msra.mxu0 %v2274_v14 }
 0x3cd   :  { %2171 = vmatmul.mubr.bf16.vlgmr.msra.gmra.mxu0 %v626_v15 }
 0x48d   :  { %v713_v18 = vpop.f32.mrf.mxu0 }
 0x48e   :  { %v714_v19 = vadd.f32 %v713_v18, %v630_v17 }
 0x48f   :  { %v2172_v20 = vpop.f32.mrf.mxu0 }
 0x491   :  { %v716_v21 = vpop.f32.mrf.mxu0 }
 0x492   :  { %v717_v22 = vadd.f32 %v716_v21, %v630_v17 }
 0x493   :  { %v2173_v23 = vpop.f32.mrf.mxu0 }
 0x494   :  { %2688 = dma.done.wait [#allocation4 + $0x3], 1024 }
 0x495   :  { %2689 = vsyncadd [#allocation4 + $0x3], 4294966272  ;;  %2174 = vmatprep.subr.bf16.mxu1 %v2712_v5  ;;  %2190 = vmatprep.mubr.msk.bf16.mxu1 %vm2713_vm0, %v2712_v5  ;;  %v2275_v24 = vld [vmem:[#allocation2 + $0xf8] sm:$0xff]   ;;  %v2276_v27 = vld [vmem:[#allocation2 + $0xf0] sm:$0xff]   ;;  %v738_v35 = vpack.c.bf16 %v717_v22, %v714_v19  ;;  %v2860_v34 = vsub.s32 6, %v2817_v25 }
 0x496   :  { %2175 = vmatpush3.bf16.msra.mxu1 %v2275_v24  ;;  %v2277_v28 = vld [vmem:[#allocation2 + $0xe8] sm:$0xff]   ;;  %v2278_v29 = vld [vmem:[#allocation2 + $0xe0] sm:$0xff]   ;;  %v2279_v30 = vld [vmem:[#allocation2 + $0xd8] sm:$0xff]  }
 0x497   :  { %2176 = vmatprep.subr.bf16.mxu1 %v2712_v5  ;;  %v2280_v31 = vld [vmem:[#allocation2 + $0xd0] sm:$0xff]   ;;  %v2281_v32 = vld [vmem:[#allocation2 + $0xc8] sm:$0xff]   ;;  %v2282_v33 = vld [vmem:[#allocation2 + $0xc0] sm:$0xff]   ;;  %v742_v36 = vrot.slane %v2787_v2, %v2860_v34 }
 0x49a   :  { %2177 = vmatpush3.bf16.msra.mxu1 %v2276_v27 }
 0x49b   :  { %2178 = vmatprep.subr.bf16.mxu1 %v2712_v5 }
 0x49e   :  { %2179 = vmatpush3.bf16.msra.mxu1 %v2277_v28 }
 0x49f   :  { %2180 = vmatprep.subr.bf16.mxu1 %v2712_v5 }
 0x4a2   :  { %2181 = vmatpush3.bf16.msra.mxu1 %v2278_v29 }
 0x4a3   :  { %2182 = vmatprep.subr.bf16.mxu1 %v2712_v5 }
 0x4a6   :  { %2183 = vmatpush3.bf16.msra.mxu1 %v2279_v30 }
 0x4a7   :  { %2184 = vmatprep.subr.bf16.mxu1 %v2712_v5 }
 0x4aa   :  { %2185 = vmatpush3.bf16.msra.mxu1 %v2280_v31 }
 0x4ab   :  { %2186 = vmatprep.subr.bf16.mxu1 %v2712_v5 }
 0x4ae   :  { %2187 = vmatpush3.bf16.msra.mxu1 %v2281_v32 }
 0x4af   :  { %2188 = vmatprep.subr.bf16.mxu1 %v2712_v5 }
 0x4b2   :  { %2189 = vmatpush3.bf16.msra.mxu1 %v2282_v33 }
 0x4b5   :  { %2191 = vmatmul.mubr.bf16.vlgmr.msra.gmra.mxu1 %v738_v35 }
 0x575   :  { %v825_v37 = vpop.f32.mrf.mxu1 }
 0x576   :  { %v826_v38 = vadd.f32 %v825_v37, %v742_v36 }
 0x577   :  { %v2192_v39 = vpop.f32.mrf.mxu1 }
 0x578   :  { %v2009_v40 = vmul.f32 -1.442695, %v826_v38 }
 0x579   :  { %v828_v41 = vpop.f32.mrf.mxu1 }
 0x57a   :  { %2283 = vpow2.f32 %v2009_v40  ;;  %v829_v60 = vadd.f32 %v828_v41, %v742_v36 }
 0x57b   :  { %v2193_v42 = vpop.f32.mrf.mxu1 }
 0x57c   :  { %v2010_v43 = vmul.f32 -1.442695, %v829_v60 }
 0x57e   :  { %2285 = vpow2.f32 %v2010_v43 }
 0x587   :  { %v2284_v44 = vpop.eup %2283 }
 0x588   :  { %v838_v45 = vadd.f32 1.0, %v2284_v44 }
 0x58a   :  { %2287 = vrcp.f32 %v838_v45 }
 0x58b   :  { %v2286_v46 = vpop.eup %2285 }
 0x58c   :  { %v839_v47 = vadd.f32 1.0, %v2286_v46 }
 0x58e   :  { %2289 = vrcp.f32 %v839_v47 }
 0x597   :  { %v2288_v48 = vpop.eup %2287 }
 0x598   :  { %v844_v51 = vmul.f32 %v2288_v48, %v714_v19 }
 0x59b   :  { %v2290_v52 = vpop.eup %2289 }
 0x59c   :  { %v845_v53 = vmul.f32 %v2290_v52, %v717_v22 }
 0x59d   :  { %2690 = dma.done.wait [#allocation4 + $0x4], 2048 }
 0x59e   :  { %2691 = vsyncadd [#allocation4 + $0x4], 4294965248  ;;  %985 = vmatprep.mubr.bf16.mxu0 %v2711_v6  ;;  %v2291_v54 = vld [vmem:[#allocation3 + $0xf4] ss:$8 sps:$4 sm:$0xff]   ;;  %v2293_v55 = vld [vmem:[#allocation3 + $0xf0] ss:$8 sps:$4 sm:$0xff]   ;;  %v2865_v13 = vpack.c.bf16 %v845_v53, %v844_v51  ;;  %v868_v14 = vrot.slane %v2783_v0, %v2843_v49  ;;  %v872_v15 = vrot.slane %v2785_v1, %v2843_v49 }
 0x59f   :  { %953 = vmatprep.subr.bf16.mxu0 %v2291_v54  ;;  %v2294_v56 = vld [vmem:[#allocation3 + $0xe4] ss:$8 sps:$4 sm:$0xff]   ;;  %v2296_v57 = vld [vmem:[#allocation3 + $0xe0] ss:$8 sps:$4 sm:$0xff]   ;;  %v2297_v58 = vld [vmem:[#allocation3 + $0xd4] ss:$8 sps:$4 sm:$0xff]  }
 0x5a0   :  { %954 = vmatpush1.bf16.msra.mxu0 %v2293_v55  ;;  %v2299_v61 = vld [vmem:[#allocation3 + $0xd0] ss:$8 sps:$4 sm:$0xff]   ;;  %v2300_v62 = vld [vmem:[#allocation3 + $0xc4] ss:$8 sps:$4 sm:$0xff]   ;;  %v2302_v63 = vld [vmem:[#allocation3 + $0xc0] ss:$8 sps:$4 sm:$0xff]  }
 0x5a1   :  { %955 = vmatprep.subr.bf16.mxu0 %v2294_v56  ;;  %v2303_v4 = vld [vmem:[#allocation3 + $0xb4] ss:$8 sps:$4 sm:$0xff]   ;;  %v2305_v5 = vld [vmem:[#allocation3 + $0xb0] ss:$8 sps:$4 sm:$0xff]   ;;  %v2306_v7 = vld [vmem:[#allocation3 + $0xa4] ss:$8 sps:$4 sm:$0xff]  }
 0x5a2   :  { %v2308_v8 = vld [vmem:[#allocation3 + $0xa0] ss:$8 sps:$4 sm:$0xff]   ;;  %v2309_v9 = vld [vmem:[#allocation3 + $0x94] ss:$8 sps:$4 sm:$0xff]   ;;  %v2311_v10 = vld [vmem:[#allocation3 + $0x90] ss:$8 sps:$4 sm:$0xff]  }
 0x5a3   :  { %v2312_v11 = vld [vmem:[#allocation3 + $0x84] ss:$8 sps:$4 sm:$0xff]   ;;  %v2314_v12 = vld [vmem:[#allocation3 + $0x80] ss:$8 sps:$4 sm:$0xff]  }
 0x5a4   :  { %956 = vmatpush1.bf16.msra.mxu0 %v2296_v57 }
 0x5a5   :  { %957 = vmatprep.subr.bf16.mxu0 %v2297_v58 }
 0x5a8   :  { %958 = vmatpush1.bf16.msra.mxu0 %v2299_v61 }
 0x5a9   :  { %959 = vmatprep.subr.bf16.mxu0 %v2300_v62 }
 0x5ac   :  { %960 = vmatpush1.bf16.msra.mxu0 %v2302_v63  ;;  %v1025_v63 = vrot.slane %v2783_v0, %v2846_v50 }
 0x5ad   :  { %961 = vmatprep.subr.bf16.mxu0 %v2303_v4 }
 0x5b0   :  { %962 = vmatpush1.bf16.msra.mxu0 %v2305_v5  ;;  %v1031_v5 = vrot.slane %v2783_v0, %v2854_v16 }
 0x5b1   :  { %963 = vmatprep.subr.bf16.mxu0 %v2306_v7 }
 0x5b4   :  { %964 = vmatpush1.bf16.msra.mxu0 %v2308_v8 }
 0x5b5   :  { %965 = vmatprep.subr.bf16.mxu0 %v2309_v9 }
 0x5b8   :  { %966 = vmatpush1.bf16.msra.mxu0 %v2311_v10 }
 0x5b9   :  { %967 = vmatprep.subr.bf16.mxu0 %v2312_v11 }
 0x5bc   :  { %968 = vmatpush1.bf16.msra.mxu0 %v2314_v12 }
 0x5bf   :  { %986 = vmatmul.mubr.bf16.vlgmr.msra.gmra.mxu0 %v2865_v13 }
 0x67f   :  { %v987_v17 = vpop.f32.mrf.mxu0 }
 0x680   :  { %v988_v18 = vadd.f32 %v987_v17, %v868_v14  ;;  %v1081_v17 = vrot.slane %v2785_v1, %v2846_v50 }
 0x681   :  { %v989_v19 = vpop.f32.mrf.mxu0 }
 0x682   :  { %v2872_v20 = vadd.f32 %v989_v19, %v872_v15  ;;  %996 = vadd.xlane.f32.xlu0 %v988_v18  ;;  %v1002_v22 = vmul.f32 %v988_v18, %v988_v18  ;;  %v1087_v19 = vrot.slane %v2785_v1, %v2854_v16 }
 0x683   :  { %v991_v21 = vpop.f32.mrf.mxu0 }
 0x684   :  { %1052 = vadd.xlane.f32.xlu1 %v2872_v20  ;;  %v992_v24 = vadd.f32 %v991_v21, %v868_v14  ;;  %v1058_v49 = vmul.f32 %v2872_v20, %v2872_v20 }
 0x685   :  { %v993_v23 = vpop.f32.mrf.mxu0 }
 0x686   :  { %v2875_v27 = vadd.f32 %v993_v23, %v872_v15  ;;  %1004 = vadd.xlane.f32.xlu0 %v1002_v22  ;;  %v1003_v28 = vmul.f32 %v992_v24, %v992_v24 }
 0x688   :  { %1054 = vadd.xlane.f32.xlu1 %v2875_v27  ;;  %v1059_v29 = vmul.f32 %v2875_v27, %v2875_v27 }
 0x68a   :  { %998 = vadd.xlane.f32.xlu0 %v992_v24 }
 0x68c   :  { %1006 = vadd.xlane.f32.xlu1 %v1003_v28 }
 0x68e   :  { %1060 = vadd.xlane.f32.xlu0 %v1058_v49 }
 0x690   :  { %1062 = vadd.xlane.f32.xlu1 %v1059_v29 }
 0x70b   :  { %v997_v30 = vpop.xlane.xlu0 %996 }
 0x70c   :  { %v1000_v31 = vmul.f32 0.0078125, %v997_v30 }
 0x70d   :  { %v1053_v32 = vpop.xlane.xlu1 %1052 }
 0x70e   :  { %v1010_v35 = vmul.f32 %v1000_v31, %v1000_v31  ;;  %v1056_v40 = vmul.f32 0.0078125, %v1053_v32  ;;  %v1014_v62 = vsub.f32 %v988_v18, %v1000_v31 }
 0x70f   :  { %v1005_v33 = vpop.xlane.xlu0 %1004 }
 0x710   :  { %v1008_v36 = vmul.f32 0.0078125, %v1005_v33  ;;  %v1066_v47 = vmul.f32 %v1056_v40, %v1056_v40  ;;  %v1070_v12 = vsub.f32 %v2872_v20, %v1056_v40 }
 0x711   :  { %v1055_v37 = vpop.xlane.xlu1 %1054 }
 0x712   :  { %v1012_v38 = vsub.f32 %v1008_v36, %v1010_v35  ;;  %v1057_v43 = vmul.f32 0.0078125, %v1055_v37 }
 0x713   :  { %v999_v39 = vpop.xlane.xlu0 %998 }
 0x714   :  { %v1016_v41 = vadd.f32 1e-05, %v1012_v38  ;;  %v1001_v60 = vmul.f32 0.0078125, %v999_v39  ;;  %v1067_v53 = vmul.f32 %v1057_v43, %v1057_v43  ;;  %v1071_v22 = vsub.f32 %v2875_v27, %v1057_v43 }
 0x715   :  { %v1007_v42 = vpop.xlane.xlu1 %1006 }
 0x716   :  { %2315 = vrsqrt.f32 %v1016_v41  ;;  %v1011_v44 = vmul.f32 %v1001_v60, %v1001_v60  ;;  %v1009_v45 = vmul.f32 0.0078125, %v1007_v42  ;;  %v1015_v10 = vsub.f32 %v992_v24, %v1001_v60 }
 0x717   :  { %v1061_v46 = vpop.xlane.xlu0 %1060 }
 0x718   :  { %v1013_v48 = vsub.f32 %v1009_v45, %v1011_v44  ;;  %v1064_v51 = vmul.f32 0.0078125, %v1061_v46 }
 0x719   :  { %v1063_v52 = vpop.xlane.xlu1 %1062 }
 0x71a   :  { %v1017_v54 = vadd.f32 1e-05, %v1013_v48  ;;  %v1068_v55 = vsub.f32 %v1064_v51, %v1066_v47  ;;  %v1065_v56 = vmul.f32 0.0078125, %v1063_v52 }
 0x71c   :  { %2317 = vrsqrt.f32 %v1017_v54  ;;  %v1072_v57 = vadd.f32 1e-05, %v1068_v55  ;;  %v1069_v58 = vsub.f32 %v1065_v56, %v1067_v53 }
 0x71e   :  { %2319 = vrsqrt.f32 %v1072_v57  ;;  %v1073_v61 = vadd.f32 1e-05, %v1069_v58 }
 0x720   :  { %2321 = vrsqrt.f32 %v1073_v61 }
 0x723   :  { %v2316_v4 = vpop.eup %2315 }
 0x724   :  { %v1020_v7 = vmul.f32 %v2316_v4, %v1014_v62 }
 0x726   :  { %v1026_v8 = vmul.f32 %v1025_v63, %v1020_v7 }
 0x728   :  { %v1032_v9 = vadd.f32 %v1031_v5, %v1026_v8 }
 0x729   :  { %v2318_v11 = vpop.eup %2317 }
 0x72a   :  { %v1036_v14 = vmul.f32 0.044715, %v1032_v9  ;;  %v1021_v15 = vmul.f32 %v2318_v11, %v1015_v10  ;;  %v1034_v51 = vmul.f32 0.5, %v1032_v9 }
 0x72b   :  { %v2320_v18 = vpop.eup %2319 }
 0x72c   :  { %v1038_v21 = vmul.f32 %v1036_v14, %v1032_v9  ;;  %v1027_v23 = vmul.f32 %v1025_v63, %v1021_v15  ;;  %v1076_v28 = vmul.f32 %v2320_v18, %v1070_v12 }
 0x72d   :  { %v2322_v49 = vpop.eup %2321 }
 0x72e   :  { %v1040_v29 = vmul.f32 %v1038_v21, %v1032_v9  ;;  %v1033_v24 = vadd.f32 %v1031_v5, %v1027_v23  ;;  %v1082_v30 = vmul.f32 %v1081_v17, %v1076_v28  ;;  %v1077_v31 = vmul.f32 %v2322_v49, %v1071_v22 }
 0x730   :  { %v1042_v20 = vadd.f32 %v1040_v29, %v1032_v9  ;;  %v1037_v32 = vmul.f32 0.044715, %v1033_v24  ;;  %v1088_v33 = vadd.f32 %v1087_v19, %v1082_v30  ;;  %v1083_v35 = vmul.f32 %v1081_v17, %v1077_v31 }
 0x731   :  { %v1035_v55 = vmul.f32 0.5, %v1033_v24 }
 0x732   :  { %v1044_v36 = vmul.f32 0.7978846, %v1042_v20  ;;  %v1039_v50 = vmul.f32 %v1037_v32, %v1033_v24  ;;  %v1092_v37 = vmul.f32 0.044715, %v1088_v33  ;;  %v1089_v38 = vadd.f32 %v1087_v19, %v1083_v35 }
 0x733   :  { %v1090_v61 = vmul.f32 0.5, %v1088_v33 }
 0x734   :  { %2323 = vtanh.f32 %v1044_v36  ;;  %v1041_v16 = vmul.f32 %v1039_v50, %v1033_v24  ;;  %v1094_v39 = vmul.f32 %v1092_v37, %v1088_v33  ;;  %v1093_v40 = vmul.f32 0.044715, %v1089_v38 }
 0x735   :  { %v1091_v5 = vmul.f32 0.5, %v1089_v38 }
 0x736   :  { %v1043_v27 = vadd.f32 %v1041_v16, %v1033_v24  ;;  %v1096_v41 = vmul.f32 %v1094_v39, %v1088_v33  ;;  %v1095_v60 = vmul.f32 %v1093_v40, %v1089_v38 }
 0x738   :  { %v1045_v42 = vmul.f32 0.7978846, %v1043_v27  ;;  %v1098_v43 = vadd.f32 %v1096_v41, %v1088_v33  ;;  %v1097_v44 = vmul.f32 %v1095_v60, %v1089_v38 }
 0x73a   :  { %2325 = vtanh.f32 %v1045_v42  ;;  %v1100_v45 = vmul.f32 0.7978846, %v1098_v43  ;;  %v1099_v46 = vadd.f32 %v1097_v44, %v1089_v38 }
 0x73c   :  { %2327 = vtanh.f32 %v1100_v45  ;;  %v1101_v47 = vmul.f32 0.7978846, %v1099_v46 }
 0x73e   :  { %2329 = vtanh.f32 %v1101_v47 }
 0x741   :  { %v2324_v48 = vpop.eup %2323 }
 0x742   :  { %v1048_v52 = vadd.f32 1.0, %v2324_v48 }
 0x744   :  { %v2892_v53 = vmul.f32 %v1048_v52, %v1034_v51 }
 0x747   :  { %v2326_v54 = vpop.eup %2325 }
 0x748   :  { %v1049_v56 = vadd.f32 1.0, %v2326_v54 }
 0x749   :  { %v2328_v57 = vpop.eup %2327 }
 0x74a   :  { %v2894_v58 = vmul.f32 %v1049_v56, %v1035_v55  ;;  %v1104_v62 = vadd.f32 1.0, %v2328_v57 }
 0x74b   :  { %v2330_v63 = vpop.eup %2329 }
 0x74c   :  { %v2896_v4 = vmul.f32 %v1104_v62, %v1090_v61  ;;  %v1105_v7 = vadd.f32 1.0, %v2330_v63 }
 0x74e   :  { %v2898_v8 = vmul.f32 %v1105_v7, %v1091_v5 }
 0x74f   :  { %2692 = dma.done.wait [#allocation4 + $0x5], 6144 }
 0x750   :  { %2693 = vsyncadd [#allocation4 + $0x5], 4294961152  ;;  %1257 = vmatprep.mubr.bf16.mxu1 %v2711_v6  ;;  %1380 = vmatprep.mubr.bf16.mxu0 %v2711_v6  ;;  %v2331_v9 = vld [vmem:[#allocation3 + $0x1f4] ss:$8 sps:$4 sm:$0xff]   ;;  %v2335_v11 = vld [vmem:[#allocation3 + $0x1f0] ss:$8 sps:$4 sm:$0xff]   ;;  %v1128_v43 = vpack.c.bf16 %v2894_v58, %v2892_v53  ;;  %v1391_v61 = vpack.c.bf16 %v2898_v8, %v2896_v4 }
 0x751   :  { %v2333_v10 = vld [vmem:[#allocation3 + $0x174] ss:$8 sps:$4 sm:$0xff]   ;;  %1225 = vmatprep.subr.bf16.mxu1 %v2331_v9  ;;  %v2336_v12 = vld [vmem:[#allocation3 + $0x170] ss:$8 sps:$4 sm:$0xff]   ;;  %v2337_v14 = vld [vmem:[#allocation3 + $0x1e4] ss:$8 sps:$4 sm:$0xff]  }
 0x752   :  { %1348 = vmatprep.subr.bf16.mxu0 %v2333_v10  ;;  %1226 = vmatpush1.bf16.msra.mxu1 %v2335_v11  ;;  %v2339_v15 = vld [vmem:[#allocation3 + $0x164] ss:$8 sps:$4 sm:$0xff]   ;;  %v2341_v17 = vld [vmem:[#allocation3 + $0x1e0] ss:$8 sps:$4 sm:$0xff]   ;;  %v2343_v19 = vld [vmem:[#allocation3 + $0x1d4] ss:$8 sps:$4 sm:$0xff]  }
 0x753   :  { %1349 = vmatpush1.bf16.msra.mxu0 %v2336_v12  ;;  %1227 = vmatprep.subr.bf16.mxu1 %v2337_v14  ;;  %v2342_v18 = vld [vmem:[#allocation3 + $0x160] ss:$8 sps:$4 sm:$0xff]   ;;  %v2345_v21 = vld [vmem:[#allocation3 + $0x154] ss:$8 sps:$4 sm:$0xff]   ;;  %v2347_v22 = vld [vmem:[#allocation3 + $0x1d0] ss:$8 sps:$4 sm:$0xff]   ;;  %v1538_v14 = vrot.slane %v2783_v0, %v2860_v34 }
 0x754   :  { %1350 = vmatprep.subr.bf16.mxu0 %v2339_v15  ;;  %v2348_v23 = vld [vmem:[#allocation3 + $0x150] ss:$8 sps:$4 sm:$0xff]   ;;  %v2349_v28 = vld [vmem:[#allocation3 + $0x1c4] ss:$8 sps:$4 sm:$0xff]   ;;  %v2353_v29 = vld [vmem:[#allocation3 + $0x1c0] ss:$8 sps:$4 sm:$0xff]  }
 0x755   :  { %v2351_v49 = vld [vmem:[#allocation3 + $0x144] ss:$8 sps:$4 sm:$0xff]   ;;  %v2354_v24 = vld [vmem:[#allocation3 + $0x140] ss:$8 sps:$4 sm:$0xff]   ;;  %v2355_v30 = vld [vmem:[#allocation3 + $0x1b4] ss:$8 sps:$4 sm:$0xff]  }
 0x756   :  { %1228 = vmatpush1.bf16.msra.mxu1 %v2341_v17  ;;  %v2357_v31 = vld [vmem:[#allocation3 + $0x134] ss:$8 sps:$4 sm:$0xff]   ;;  %v2359_v20 = vld [vmem:[#allocation3 + $0x1b0] ss:$8 sps:$4 sm:$0xff]   ;;  %v2361_v33 = vld [vmem:[#allocation3 + $0x1a4] ss:$8 sps:$4 sm:$0xff]  }
 0x757   :  { %1351 = vmatpush1.bf16.msra.mxu0 %v2342_v18  ;;  %1229 = vmatprep.subr.bf16.mxu1 %v2343_v19  ;;  %v2360_v32 = vld [vmem:[#allocation3 + $0x130] ss:$8 sps:$4 sm:$0xff]   ;;  %v2363_v35 = vld [vmem:[#allocation3 + $0x124] ss:$8 sps:$4 sm:$0xff]   ;;  %v2365_v36 = vld [vmem:[#allocation3 + $0x1a0] ss:$8 sps:$4 sm:$0xff]   ;;  %v1542_v19 = vrot.slane %v2785_v1, %v2860_v34 }
 0x758   :  { %1352 = vmatprep.subr.bf16.mxu0 %v2345_v21  ;;  %v2366_v50 = vld [vmem:[#allocation3 + $0x120] ss:$8 sps:$4 sm:$0xff]   ;;  %v2367_v37 = vld [vmem:[#allocation3 + $0x194] ss:$8 sps:$4 sm:$0xff]   ;;  %v2371_v16 = vld [vmem:[#allocation3 + $0x190] ss:$8 sps:$4 sm:$0xff]  }
 0x759   :  { %v2369_v38 = vld [vmem:[#allocation3 + $0x114] ss:$8 sps:$4 sm:$0xff]   ;;  %v2372_v39 = vld [vmem:[#allocation3 + $0x110] ss:$8 sps:$4 sm:$0xff]   ;;  %v2373_v40 = vld [vmem:[#allocation3 + $0x184] ss:$8 sps:$4 sm:$0xff]  }
 0x75a   :  { %1230 = vmatpush1.bf16.msra.mxu1 %v2347_v22  ;;  %v2375_v27 = vld [vmem:[#allocation3 + $0x104] ss:$8 sps:$4 sm:$0xff]   ;;  %v2377_v41 = vld [vmem:[#allocation3 + $0x180] ss:$8 sps:$4 sm:$0xff]   ;;  %v2381_v42 = vld [vmem:[#allocation3 + $0x274] ss:$8 sps:$4 sm:$0xff]  }
 0x75b   :  { %1353 = vmatpush1.bf16.msra.mxu0 %v2348_v23  ;;  %1231 = vmatprep.subr.bf16.mxu1 %v2349_v28  ;;  %v2378_v60 = vld [vmem:[#allocation3 + $0x100] ss:$8 sps:$4 sm:$0xff]   ;;  %v2379_v44 = vld [vmem:[#allocation3 + $0x270] ss:$8 sps:$4 sm:$0xff]   ;;  %v2384_v45 = vld [vmem:[#allocation3 + $0x264] ss:$8 sps:$4 sm:$0xff]  }
 0x75c   :  { %1354 = vmatprep.subr.bf16.mxu0 %v2351_v49  ;;  %v2382_v46 = vld [vmem:[#allocation3 + $0x260] ss:$8 sps:$4 sm:$0xff]   ;;  %v2387_v47 = vld [vmem:[#allocation3 + $0x254] ss:$8 sps:$4 sm:$0xff]   ;;  %v2385_v48 = vld [vmem:[#allocation3 + $0x250] ss:$8 sps:$4 sm:$0xff]  }
 0x75d   :  { %v2390_v51 = vld [vmem:[#allocation3 + $0x244] ss:$8 sps:$4 sm:$0xff]   ;;  %v2388_v52 = vld [vmem:[#allocation3 + $0x240] ss:$8 sps:$4 sm:$0xff]   ;;  %v2393_v53 = vld [vmem:[#allocation3 + $0x234] ss:$8 sps:$4 sm:$0xff]  }
 0x75e   :  { %1232 = vmatpush1.bf16.msra.mxu1 %v2353_v29  ;;  %v2391_v54 = vld [vmem:[#allocation3 + $0x230] ss:$8 sps:$4 sm:$0xff]   ;;  %v2396_v55 = vld [vmem:[#allocation3 + $0x224] ss:$8 sps:$4 sm:$0xff]   ;;  %v2399_v56 = vld [vmem:[#allocation3 + $0x214] ss:$8 sps:$4 sm:$0xff]  }
 0x75f   :  { %1355 = vmatpush1.bf16.msra.mxu0 %v2354_v24  ;;  %1233 = vmatprep.subr.bf16.mxu1 %v2355_v30  ;;  %v2402_v57 = vld [vmem:[#allocation3 + $0x204] ss:$8 sps:$4 sm:$0xff]   ;;  %v2400_v58 = vld [vmem:[#allocation3 + $0x200] ss:$8 sps:$4 sm:$0xff]  }
 0x760   :  { %1356 = vmatprep.subr.bf16.mxu0 %v2357_v31 }
 0x762   :  { %1234 = vmatpush1.bf16.msra.mxu1 %v2359_v20 }
 0x763   :  { %1357 = vmatpush1.bf16.msra.mxu0 %v2360_v32  ;;  %1235 = vmatprep.subr.bf16.mxu1 %v2361_v33 }
 0x764   :  { %1358 = vmatprep.subr.bf16.mxu0 %v2363_v35 }
 0x766   :  { %1236 = vmatpush1.bf16.msra.mxu1 %v2365_v36 }
 0x767   :  { %1359 = vmatpush1.bf16.msra.mxu0 %v2366_v50  ;;  %1237 = vmatprep.subr.bf16.mxu1 %v2367_v37 }
 0x768   :  { %1360 = vmatprep.subr.bf16.mxu0 %v2369_v38 }
 0x76a   :  { %1238 = vmatpush1.bf16.msra.mxu1 %v2371_v16 }
 0x76b   :  { %1361 = vmatpush1.bf16.msra.mxu0 %v2372_v39  ;;  %1239 = vmatprep.subr.bf16.mxu1 %v2373_v40 }
 0x76c   :  { %1362 = vmatprep.subr.bf16.mxu0 %v2375_v27 }
 0x76e   :  { %1240 = vmatpush1.bf16.msra.mxu1 %v2377_v41 }
 0x76f   :  { %1363 = vmatpush1.bf16.msra.mxu0 %v2378_v60  ;;  %1488 = vmatprep.subr.bf16.mxu1 %v2381_v42 }
 0x771   :  { %1258 = vmatmul.mubr.bf16.vlgmr.msra.gmra.mxu1 %v1128_v43 }
 0x772   :  { %1381 = vmatmul.mubr.bf16.vlgmr.msra.gmra.mxu0 %v2865_v13  ;;  %1489 = vmatpush1.bf16.msra.mxu1 %v2379_v44  ;;  %v2394_v13 = vld [vmem:[#allocation3 + $0x220] ss:$8 sps:$4 sm:$0xff]  }
 0x773   :  { %1520 = vmatprep.mubr.bf16.mxu1 %v2711_v6  ;;  %1490 = vmatprep.subr.bf16.mxu1 %v2384_v45  ;;  %v2397_v6 = vld [vmem:[#allocation3 + $0x210] ss:$8 sps:$4 sm:$0xff]  }
 0x776   :  { %1491 = vmatpush1.bf16.msra.mxu1 %v2382_v46 }
 0x777   :  { %1492 = vmatprep.subr.bf16.mxu1 %v2387_v47 }
 0x77a   :  { %1493 = vmatpush1.bf16.msra.mxu1 %v2385_v48 }
 0x77b   :  { %1494 = vmatprep.subr.bf16.mxu1 %v2390_v51 }
 0x77e   :  { %1495 = vmatpush1.bf16.msra.mxu1 %v2388_v52 }
 0x77f   :  { %1496 = vmatprep.subr.bf16.mxu1 %v2393_v53  ;;  %v1585_v53 = vsub.s32 7, %v2817_v25 }
 0x782   :  { %1497 = vmatpush1.bf16.msra.mxu1 %v2391_v54 }
 0x783   :  { %1498 = vmatprep.subr.bf16.mxu1 %v2396_v55 }
 0x786   :  { %1499 = vmatpush1.bf16.msra.mxu1 %v2394_v13  ;;  %v1586_v13 = vrot.slane %v2783_v0, %v1585_v53 }
 0x787   :  { %1500 = vmatprep.subr.bf16.mxu1 %v2399_v56  ;;  %v1590_v56 = vrot.slane %v2785_v1, %v1585_v53 }
 0x78a   :  { %1501 = vmatpush1.bf16.msra.mxu1 %v2397_v6 }
 0x78b   :  { %1502 = vmatprep.subr.bf16.mxu1 %v2402_v57  ;;  %v1598_v57 = vrot.slane %v2787_v2, %v2820_v26 }
 0x78e   :  { %1503 = vmatpush1.bf16.msra.mxu1 %v2400_v58  ;;  %v1602_v58 = vrot.slane %v2789_v3, %v2820_v26 }
 0x791   :  { %1521 = vmatmul.mubr.bf16.vlgmr.msra.gmra.mxu1 %v1391_v61 }
 0x831   :  { %v1259_v62 = vpop.f32.mrf.mxu1 }
 0x832   :  { %v1382_v63 = vpop.f32.mrf.mxu0 }
 0x833   :  { %v1261_v5 = vpop.f32.mrf.mxu1  ;;  %v1383_v12 = vadd.f32 %v1382_v63, %v1259_v62 }
 0x834   :  { %v1384_v7 = vpop.f32.mrf.mxu0 }
 0x835   :  { %v1263_v9 = vpop.f32.mrf.mxu1  ;;  %v1385_v17 = vadd.f32 %v1384_v7, %v1261_v5 }
 0x836   :  { %v1386_v10 = vpop.f32.mrf.mxu0 }
 0x837   :  { %v1265_v11 = vpop.f32.mrf.mxu1  ;;  %v1387_v21 = vadd.f32 %v1386_v10, %v1263_v9 }
 0x838   :  { %v1388_v4 = vpop.f32.mrf.mxu0 }
 0x839   :  { %v1389_v49 = vadd.f32 %v1388_v4, %v1265_v11 }
 0x851   :  { %v1522_v15 = vpop.f32.mrf.mxu1 }
 0x852   :  { %v1531_v18 = vadd.f32 %v1522_v15, %v1383_v12 }
 0x853   :  { %v1524_v8 = vpop.f32.mrf.mxu1 }
 0x854   :  { %v1543_v22 = vadd.f32 %v1538_v14, %v1531_v18  ;;  %v1532_v23 = vadd.f32 %v1524_v8, %v1385_v17 }
 0x855   :  { %v1526_v28 = vpop.f32.mrf.mxu1 }
 0x856   :  { %v1544_v29 = vadd.f32 %v1542_v19, %v1532_v23  ;;  %v1533_v24 = vadd.f32 %v1526_v28, %v1387_v21  ;;  %v1555_v31 = vmul.f32 %v1543_v22, %v1543_v22 }
 0x857   :  { %v1528_v30 = vpop.f32.mrf.mxu1 }
 0x858   :  { %v1545_v20 = vadd.f32 %v1538_v14, %v1533_v24  ;;  %v1534_v32 = vadd.f32 %v1528_v30, %v1389_v49  ;;  %v1547_v33 = vadd.f32 %v1544_v29, %v1543_v22  ;;  %v1556_v35 = vmul.f32 %v1544_v29, %v1544_v29 }
 0x85a   :  { %v1546_v36 = vadd.f32 %v1542_v19, %v1534_v32  ;;  %1548 = vadd.xlane.f32.xlu0 %v1547_v33  ;;  %v1559_v50 = vadd.f32 %v1556_v35, %v1555_v31  ;;  %v1557_v37 = vmul.f32 %v1545_v20, %v1545_v20 }
 0x85c   :  { %1560 = vadd.xlane.f32.xlu1 %v1559_v50  ;;  %v1550_v34 = vadd.f32 %v1546_v36, %v1545_v20  ;;  %v1558_v38 = vmul.f32 %v1546_v36, %v1546_v36 }
 0x85e   :  { %1551 = vadd.xlane.f32.xlu0 %v1550_v34  ;;  %v1562_v16 = vadd.f32 %v1558_v38, %v1557_v37 }
 0x860   :  { %1563 = vadd.xlane.f32.xlu1 %v1562_v16 }
 0x8e3   :  { %v1549_v39 = vpop.xlane.xlu0 %1548 }
 0x8e4   :  { %v1553_v40 = vmul.f32 0.00390625, %v1549_v39 }
 0x8e5   :  { %v1561_v27 = vpop.xlane.xlu1 %1560 }
 0x8e6   :  { %v1565_v41 = vmul.f32 0.00390625, %v1561_v27  ;;  %v1567_v60 = vmul.f32 %v1553_v40, %v1553_v40  ;;  %v1571_v54 = vsub.f32 %v1543_v22, %v1553_v40  ;;  %v1572_v55 = vsub.f32 %v1544_v29, %v1553_v40 }
 0x8e7   :  { %v1552_v42 = vpop.xlane.xlu0 %1551 }
 0x8e8   :  { %v1569_v43 = vsub.f32 %v1565_v41, %v1567_v60  ;;  %v1554_v44 = vmul.f32 0.00390625, %v1552_v42 }
 0x8e9   :  { %v1564_v45 = vpop.xlane.xlu1 %1563 }
 0x8ea   :  { %v1575_v46 = vadd.f32 1e-05, %v1569_v43  ;;  %v1566_v47 = vmul.f32 0.00390625, %v1564_v45  ;;  %v1568_v48 = vmul.f32 %v1554_v44, %v1554_v44  ;;  %v1573_v7 = vsub.f32 %v1545_v20, %v1554_v44 }
 0x8eb   :  { %v1574_v9 = vsub.f32 %v1546_v36, %v1554_v44 }
 0x8ec   :  { %2403 = vrsqrt.f32 %v1575_v46  ;;  %v1570_v51 = vsub.f32 %v1566_v47, %v1568_v48 }
 0x8ee   :  { %v1576_v52 = vadd.f32 1e-05, %v1570_v51 }
 0x8f0   :  { %2405 = vrsqrt.f32 %v1576_v52 }
 0x8f9   :  { %v2404_v6 = vpop.eup %2403 }
 0x8fa   :  { %v1579_v61 = vmul.f32 %v2404_v6, %v1571_v54  ;;  %v1580_v62 = vmul.f32 %v2404_v6, %v1572_v55 }
 0x8fc   :  { %v1591_v63 = vmul.f32 %v1586_v13, %v1579_v61  ;;  %v1592_v5 = vmul.f32 %v1590_v56, %v1580_v62 }
 0x8fd   :  { %v2406_v25 = vpop.eup %2405 }
 0x8fe   :  { %v1603_v10 = vadd.f32 %v1598_v57, %v1591_v63  ;;  %v1604_v11 = vadd.f32 %v1602_v58, %v1592_v5  ;;  %v1581_v12 = vmul.f32 %v2406_v25, %v1573_v7  ;;  %v1582_v0 = vmul.f32 %v2406_v25, %v1574_v9 }
 0x900   :  { %v1611_v14 = vmul.f32 0.044715, %v1603_v10  ;;  %v1612_v1 = vmul.f32 0.044715, %v1604_v11  ;;  %v1593_v15 = vmul.f32 %v1586_v13, %v1581_v12  ;;  %v1594_v17 = vmul.f32 %v1590_v56, %v1582_v0 }
 0x901   :  { %v1607_v38 = vmul.f32 0.5, %v1603_v10  ;;  %v1608_v39 = vmul.f32 0.5, %v1604_v11 }
 0x902   :  { %v1615_v18 = vmul.f32 %v1611_v14, %v1603_v10  ;;  %v1616_v19 = vmul.f32 %v1612_v1, %v1604_v11  ;;  %v1605_v4 = vadd.f32 %v1598_v57, %v1593_v15  ;;  %v1606_v8 = vadd.f32 %v1602_v58, %v1594_v17 }
 0x904   :  { %v1619_v26 = vmul.f32 %v1615_v18, %v1603_v10  ;;  %v1620_v21 = vmul.f32 %v1616_v19, %v1604_v11  ;;  %v1613_v22 = vmul.f32 0.044715, %v1605_v4  ;;  %v1614_v23 = vmul.f32 0.044715, %v1606_v8 }
 0x905   :  { %v1609_v43 = vmul.f32 0.5, %v1605_v4  ;;  %v1610_v45 = vmul.f32 0.5, %v1606_v8 }
 0x906   :  { %v1623_v28 = vadd.f32 %v1619_v26, %v1603_v10  ;;  %v1624_v49 = vadd.f32 %v1620_v21, %v1604_v11  ;;  %v1617_v29 = vmul.f32 %v1613_v22, %v1605_v4  ;;  %v1618_v24 = vmul.f32 %v1614_v23, %v1606_v8 }
 0x908   :  { %v1627_v30 = vmul.f32 0.7978846, %v1623_v28  ;;  %v1628_v31 = vmul.f32 0.7978846, %v1624_v49  ;;  %v1621_v20 = vmul.f32 %v1617_v29, %v1605_v4  ;;  %v1622_v32 = vmul.f32 %v1618_v24, %v1606_v8 }
 0x90a   :  { %2407 = vtanh.f32 %v1627_v30  ;;  %v1625_v33 = vadd.f32 %v1621_v20, %v1605_v4  ;;  %v1626_v35 = vadd.f32 %v1622_v32, %v1606_v8 }
 0x90b   :  { %2409 = vtanh.f32 %v1628_v31 }
 0x90c   :  { %v1629_v36 = vmul.f32 0.7978846, %v1625_v33  ;;  %v1630_v50 = vmul.f32 0.7978846, %v1626_v35 }
 0x90e   :  { %2411 = vtanh.f32 %v1629_v36 }
 0x90f   :  { %2413 = vtanh.f32 %v1630_v50 }
 0x917   :  { %v2408_v34 = vpop.eup %2407 }
 0x918   :  { %v2410_v37 = vpop.eup %2409  ;;  %v1635_v16 = vadd.f32 1.0, %v2408_v34 }
 0x919   :  { %v1636_v40 = vadd.f32 1.0, %v2410_v37 }
 0x91a   :  { %v2919_v27 = vmul.f32 %v1635_v16, %v1607_v38 }
 0x91b   :  { %v1640_v41 = vmul.f32 %v1636_v40, %v1608_v39  ;;  %v2412_v60 = vpop.eup %2411 }
 0x91c   :  { %v2414_v42 = vpop.eup %2413  ;;  %v1637_v44 = vadd.f32 1.0, %v2412_v60 }
 0x91d   :  { %v1638_v46 = vadd.f32 1.0, %v2414_v42 }
 0x91e   :  { %v2921_v47 = vmul.f32 %v1637_v44, %v1609_v43 }
 0x91f   :  { %v1642_v48 = vmul.f32 %v1638_v46, %v1610_v45 }
 0x920   :  { %2694 = dma.done.wait [#allocation4 + $0x6], 4096 }
 0x921   :  { %2695 = vsyncadd [#allocation4 + $0x6], 4294963200  ;;  %v1679_v51 = vpack.c.bf16 %v1642_v48, %v1640_v41  ;;  %v2415_v52 = vld [vmem:[#allocation3 + $0x2f4] ss:$8 sps:$4 sm:$0xff]   ;;  %v2417_v53 = vld [vmem:[#allocation3 + $0x2f0] ss:$8 sps:$4 sm:$0xff]   ;;  %v1678_v28 = vpack.c.bf16 %v2921_v47, %v2919_v27  ;;  %v1683_v49 = vrot.slane %v2787_v2, %v2827_v59  ;;  %v1687_v29 = vrot.slane %v2789_v3, %v2827_v59 }
 0x922   :  { %1848 = vmatprep.subr.bf16.mxu0 %v2415_v52  ;;  %v2418_v54 = vld [vmem:[#allocation3 + $0x2e4] ss:$8 sps:$4 sm:$0xff]   ;;  %v2420_v55 = vld [vmem:[#allocation3 + $0x2e0] ss:$8 sps:$4 sm:$0xff]   ;;  %v2421_v13 = vld [vmem:[#allocation3 + $0x2d4] ss:$8 sps:$4 sm:$0xff]  }
 0x923   :  { %1880 = vmatprep.mubr.bf16.mxu0 %v1679_v51  ;;  %1849 = vmatpush1.bf16.msra.mxu0 %v2417_v53  ;;  %v2423_v56 = vld [vmem:[#allocation3 + $0x2d0] ss:$8 sps:$4 sm:$0xff]   ;;  %v2424_v6 = vld [vmem:[#allocation3 + $0x2c4] ss:$8 sps:$4 sm:$0xff]   ;;  %v2426_v57 = vld [vmem:[#allocation3 + $0x2c0] ss:$8 sps:$4 sm:$0xff]  }
 0x924   :  { %1850 = vmatprep.subr.bf16.mxu0 %v2418_v54  ;;  %v2427_v58 = vld [vmem:[#allocation3 + $0x2b4] ss:$8 sps:$4 sm:$0xff]   ;;  %v2429_v61 = vld [vmem:[#allocation3 + $0x2b0] ss:$8 sps:$4 sm:$0xff]   ;;  %v2430_v62 = vld [vmem:[#allocation3 + $0x2a4] ss:$8 sps:$4 sm:$0xff]  }
 0x925   :  { %v2432_v63 = vld [vmem:[#allocation3 + $0x2a0] ss:$8 sps:$4 sm:$0xff]   ;;  %v2433_v5 = vld [vmem:[#allocation3 + $0x294] ss:$8 sps:$4 sm:$0xff]   ;;  %v2435_v7 = vld [vmem:[#allocation3 + $0x290] ss:$8 sps:$4 sm:$0xff]  }
 0x926   :  { %v2436_v9 = vld [vmem:[#allocation3 + $0x284] ss:$8 sps:$4 sm:$0xff]   ;;  %v2438_v25 = vld [vmem:[#allocation3 + $0x280] ss:$8 sps:$4 sm:$0xff]   ;;  %v2439_v10 = vld [vmem:[#allocation3 + $0x374] ss:$8 sps:$4 sm:$0xff]  }
 0x927   :  { %1851 = vmatpush1.bf16.msra.mxu0 %v2420_v55  ;;  %v2441_v11 = vld [vmem:[#allocation3 + $0x370] ss:$8 sps:$4 sm:$0xff]   ;;  %v2442_v12 = vld [vmem:[#allocation3 + $0x364] ss:$8 sps:$4 sm:$0xff]   ;;  %v2444_v0 = vld [vmem:[#allocation3 + $0x360] ss:$8 sps:$4 sm:$0xff]  }
 0x928   :  { %1852 = vmatprep.subr.bf16.mxu0 %v2421_v13  ;;  %v2445_v14 = vld [vmem:[#allocation3 + $0x354] ss:$8 sps:$4 sm:$0xff]   ;;  %v2447_v1 = vld [vmem:[#allocation3 + $0x350] ss:$8 sps:$4 sm:$0xff]   ;;  %v2448_v15 = vld [vmem:[#allocation3 + $0x344] ss:$8 sps:$4 sm:$0xff]  }
 0x929   :  { %v2450_v17 = vld [vmem:[#allocation3 + $0x340] ss:$8 sps:$4 sm:$0xff]   ;;  %v2451_v18 = vld [vmem:[#allocation3 + $0x334] ss:$8 sps:$4 sm:$0xff]   ;;  %v2453_v19 = vld [vmem:[#allocation3 + $0x330] ss:$8 sps:$4 sm:$0xff]  }
 0x92a   :  { %v2454_v4 = vld [vmem:[#allocation3 + $0x324] ss:$8 sps:$4 sm:$0xff]   ;;  %v2456_v8 = vld [vmem:[#allocation3 + $0x320] ss:$8 sps:$4 sm:$0xff]   ;;  %v2457_v26 = vld [vmem:[#allocation3 + $0x314] ss:$8 sps:$4 sm:$0xff]  }
 0x92b   :  { %1853 = vmatpush1.bf16.msra.mxu0 %v2423_v56  ;;  %v2459_v21 = vld [vmem:[#allocation3 + $0x310] ss:$8 sps:$4 sm:$0xff]   ;;  %v2460_v22 = vld [vmem:[#allocation3 + $0x304] ss:$8 sps:$4 sm:$0xff]   ;;  %v2462_v23 = vld [vmem:[#allocation3 + $0x300] ss:$8 sps:$4 sm:$0xff]  }
 0x92c   :  { %1854 = vmatprep.subr.bf16.mxu0 %v2424_v6  ;;  %s2714_s3 = smov [#allocation10]  }
 0x92d   :  { %s1900_s29 = sshll.u32 %s2714_s3, 4  ;;  %s1901_s29 = int_to_ptr.vmem [resolvable:$true] %s1900_s29 }
 0x92e   :  { %s2658_s7 = scalar_lea.vmem %s1901_s29, 512  ;;  %p2663_p4 = scmp.lt.s32.totalorder %s1901_s29, %s1901_s29 }
 0x92f   :  { %1855 = vmatpush1.bf16.msra.mxu0 %v2426_v57  ;;  %p2659_p3 = scmp.ne.s32.totalorder %s1901_s29, %s2658_s7  ;;  %p2664_p5 = scmp.lt.s32.totalorder %s2658_s7, %s2658_s7 }
 0x930   :  { %1856 = vmatprep.subr.bf16.mxu0 %v2427_v58 }
 0x931   :  { %p2665_p6 = por %p2664_p5, %p2663_p4 }
 0x933   :  { %1857 = vmatpush1.bf16.msra.mxu0 %v2429_v61  ;;  %p2666_p7 = pnand %p2665_p6, %p2659_p3 }
 0x934   :  { %1858 = vmatprep.subr.bf16.mxu0 %v2430_v62 }
 0x937   :  { %1859 = vmatpush1.bf16.msra.mxu0 %v2432_v63 }
 0x938   :  { %1860 = vmatprep.subr.bf16.mxu0 %v2433_v5 }
 0x93b   :  { %1861 = vmatpush1.bf16.msra.mxu0 %v2435_v7 }
 0x93c   :  { %1862 = vmatprep.subr.bf16.mxu0 %v2436_v9 }
 0x93f   :  { %1863 = vmatpush1.bf16.msra.mxu0 %v2438_v25 }
 0x940   :  { %1864 = vmatprep.subr.bf16.mxu0 %v2439_v10 }
 0x943   :  { %1865 = vmatpush2.bf16.msra.mxu0 %v2441_v11 }
 0x944   :  { %1866 = vmatprep.subr.bf16.mxu0 %v2442_v12 }
 0x947   :  { %1867 = vmatpush2.bf16.msra.mxu0 %v2444_v0 }
 0x948   :  { %1868 = vmatprep.subr.bf16.mxu0 %v2445_v14 }
 0x94b   :  { %1869 = vmatpush2.bf16.msra.mxu0 %v2447_v1 }
 0x94c   :  { %1870 = vmatprep.subr.bf16.mxu0 %v2448_v15 }
 0x94f   :  { %1871 = vmatpush2.bf16.msra.mxu0 %v2450_v17 }
 0x950   :  { %1872 = vmatprep.subr.bf16.mxu0 %v2451_v18 }
 0x953   :  { %1873 = vmatpush2.bf16.msra.mxu0 %v2453_v19 }
 0x954   :  { %1874 = vmatprep.subr.bf16.mxu0 %v2454_v4 }
 0x957   :  { %1875 = vmatpush2.bf16.msra.mxu0 %v2456_v8 }
 0x958   :  { %1876 = vmatprep.subr.bf16.mxu0 %v2457_v26 }
 0x95b   :  { %1877 = vmatpush2.bf16.msra.mxu0 %v2459_v21 }
 0x95c   :  { %1878 = vmatprep.subr.bf16.mxu0 %v2460_v22 }
 0x95f   :  { %1879 = vmatpush2.bf16.msra.mxu0 %v2462_v23 }
 0x962   :  { %1881 = vmatmul.mubr.bf16.vlgmr.msra.gmra.mxu0 %v1678_v28 }
 0xa22   :  { %v1882_v24 = vpop.f32.mrf.mxu0 }
 0xa23   :  { %v1883_v30 = vadd.f32 %v1882_v24, %v1683_v49 }
 0xa24   :  { %v1884_v31 = vpop.f32.mrf.mxu0 }
 0xa25   :  { %1891 = vst [vmem:[#allocation10] sm:$0xff] %v1883_v30  ;;  %v1885_v20 = vadd.f32 %v1884_v31, %v1687_v29 }
 0xa26   :  { %v1886_v32 = vpop.f32.mrf.mxu0 }
 0xa27   :  { %1892 = vst [vmem:[#allocation10 + $0x8] sm:$0xff] %v1885_v20  ;;  %v1887_v33 = vadd.f32 %v1886_v32, %v1683_v49 }
 0xa28   :  { %v1888_v35 = vpop.f32.mrf.mxu0 }
 0xa29   :  { %1893 = vst [vmem:[#allocation10 + $0x10] sm:$0xff] %v1887_v33  ;;  %v1889_v36 = vadd.f32 %v1888_v35, %v1687_v29 }
 0xa2b   :  { %1894 = vst [vmem:[#allocation10 + $0x18] sm:$0xff] %v1889_v36 }
 0xa2c   :  { %2669 = shalt.err (!%p2666_p7)
}
 0xa2d   :  { %1906 = dma.vmem_to_hbm [thread:$0]  %s1901_s29, 512, %s2939_s4, [#allocation7], %s2702_s25, %s2702_s25, %s2703_s26  }
 0xa2e   :  { %2696 = dma.done.wait [#allocation7], 512  }
 0xa2f   :  { %2697 = vsyncadd [#allocation7], 4294966784 }
 0xa30   :  { %1910 = vsyncpa [#allocation6], 1 }
 0xa31   :  { %1911 = vsyncpa [#allocation9], 1 }
 0xa32   :  { %1912 = vsyncpa [#allocation7], 1 }
 0xa33   :  { %1913 = vsyncmov [#allocation4] }
 0xa36   :  { %s1914_s20 = vpop.sfrf %1913 }
 0xa37   :  { %p2107_p8 = scmp.ne.s32.totalorder %s1914_s20, 0 }
 0xa39   :  { %1918 = shalt.err (%p2107_p8)  }
 0xa3a   :  { %1920 = vsyncmov [#allocation4 + $0x1] }
 0xa3d   :  { %s1921_s21 = vpop.sfrf %1920 }
 0xa3e   :  { %p2108_p9 = scmp.ne.s32.totalorder %s1921_s21, 0 }
 0xa40   :  { %1925 = shalt.err (%p2108_p9)  }
 0xa41   :  { %1927 = vsyncmov [#allocation4 + $0x2] }
 0xa44   :  { %s1928_s2 = vpop.sfrf %1927 }
 0xa45   :  { %p2109_p10 = scmp.ne.s32.totalorder %s1928_s2, 0 }
 0xa47   :  { %1932 = shalt.err (%p2109_p10)  }
 0xa48   :  { %1934 = vsyncmov [#allocation4 + $0x3] }
 0xa4b   :  { %s1935_s22 = vpop.sfrf %1934 }
 0xa4c   :  { %p2110_p11 = scmp.ne.s32.totalorder %s1935_s22, 0 }
 0xa4e   :  { %1939 = shalt.err (%p2110_p11)  }
 0xa4f   :  { %1941 = vsyncmov [#allocation4 + $0x4] }
 0xa52   :  { %s1942_s4 = vpop.sfrf %1941 }
 0xa53   :  { %p2111_p12 = scmp.ne.s32.totalorder %s1942_s4, 0 }
 0xa55   :  { %1946 = shalt.err (%p2111_p12)  }
 0xa56   :  { %1948 = vsyncmov [#allocation4 + $0x5] }
 0xa59   :  { %s1949_s25 = vpop.sfrf %1948 }
 0xa5a   :  { %p2112_p13 = scmp.ne.s32.totalorder %s1949_s25, 0 }
 0xa5c   :  { %1953 = shalt.err (%p2112_p13)  }
 0xa5d   :  { %1955 = vsyncmov [#allocation4 + $0x6] }
 0xa60   :  { %s1956_s26 = vpop.sfrf %1955 }
 0xa61   :  { %p2113_p0 = scmp.ne.s32.totalorder %s1956_s26, 0 }
 0xa63   :  { %1960 = shalt.err (%p2113_p0)  }

</bundles_post_ra>
